<compile_context>
chip_gen: v5e
topology: v5e:2x2
jax: 0.10.0
libtpu: 0.0.40
codegen_flags: <defaults>
</compile_context>

<pallas_src>
import functools

import jax
import jax.numpy as jnp
import numpy as np
from jax import lax
from jax.experimental import pallas as pl
from jax.experimental.pallas import tpu as pltpu

EMBEDDING_DIM = 64            # doc_embedder.EMBEDDING_DIM (chosen for this synthetic kernel)
DOC_HIDDEN_LAYER_DIMENSION = 128
OUTPUT_DIMENSION = 256


def _lstm_proj_kernel(maxlen_ref, x_ref, len_ref, wih_ref, whh_ref, b_ref,
                      wproj_ref, bproj_ref,
                      proj_ref, hn_ref, cn_ref,
                      h_scr, c_scr, g_scr):
    """One grid step == one time chunk of the LSTM recurrence.

    maxlen_ref: [1]        int32 (SMEM, scalar-prefetched) max(lengths)
    x_ref:      [Tt*B, E]  bf16 time-chunk of time-major embeddings (rows = t-major, b-minor)
    len_ref:    [B, 1]     int32 lengths
    wih_ref:    [E, 4H]    bf16, gate columns permuted to (i, f, o, g)
    whh_ref:    [H, 4H]    bf16, same gate order
    b_ref:      [1, 4H]    f32  (b_ih + b_hh), same gate order
    wproj:      [H, O] bf16, bproj: [1, O] f32
    h_scr/c_scr: [B, H] f32 persistent carry across grid steps
    g_scr:      [Tt*B, 4H] bf16 precomputed input-gate pre-activations for this chunk
    """
    B, H = hn_ref.shape
    Tt = g_scr.shape[0] // B
    ci = pl.program_id(0)
    t0 = ci * Tt

    @pl.when(ci == 0)
    def _():
        h_scr[...] = jnp.zeros_like(h_scr)
        c_scr[...] = jnp.zeros_like(c_scr)

    # Skip fully-dead chunks: every state is already frozen once t >= max(lengths).
    @pl.when(t0 < maxlen_ref[0])
    def _():
        # Hoisted input projection: single bf16 MXU matmul for the whole chunk (f32 accum),
        # bias folded in here so the serial loop only adds the recurrent term.
        g_scr[...] = (jnp.dot(x_ref[...], wih_ref[...],
                              preferred_element_type=jnp.float32)
                      + b_ref[...]).astype(jnp.bfloat16)

        whh = whh_ref[...]                                   # [H, 4H] bf16, loop-invariant
        # Hoist the 1-lane length-mask broadcast out of the per-step chain: lane-dense [B, H].
        rem = jnp.broadcast_to(len_ref[...] - t0, (B, H))    # int32

        def step(tl, carry):
            h, c = carry                                     # [B, H] f32 each
            off = pl.multiple_of(tl * B, B)
            gates = (g_scr[pl.ds(off, B), :].astype(jnp.float32)
                     + jnp.dot(h.astype(jnp.bfloat16), whh,
                               preferred_element_type=jnp.float32))   # [B, 4H] f32
            # Gate order (i, f, o, g): one contiguous 3H sigmoid + one H tanh per step.
            # Slices sit on 128-lane boundaries (H == 128) so no cross-tile copies.
            ifo = jax.nn.sigmoid(gates[:, 0:3 * H])
            i_g = ifo[:, 0:H]
            f_g = ifo[:, H:2 * H]
            o_g = ifo[:, 2 * H:3 * H]
            g_g = jnp.tanh(gates[:, 3 * H:4 * H])
            c_new = f_g * c + i_g * g_g
            h_new = o_g * jnp.tanh(c_new)
            valid = rem > tl                                 # full-vreg VPU compare
            return jnp.where(valid, h_new, h), jnp.where(valid, c_new, c)

        # Bounded unroll: LLO can interleave adjacent timesteps without blowing the vreg file.
        unroll = max(1, min(8, Tt))
        h, c = lax.fori_loop(0, Tt, step, (h_scr[...], c_scr[...]), unroll=unroll)
        h_scr[...] = h
        c_scr[...] = c

    @pl.when(ci == pl.num_programs(0) - 1)
    def _():
        h = h_scr[...]
        hn_ref[...] = h
        cn_ref[...] = c_scr[...]
        proj_ref[...] = (jnp.dot(h.astype(jnp.bfloat16), wproj_ref[...],
                                 preferred_element_type=jnp.float32)
                         + bproj_ref[...])


def doc_projector_forward(doc_embeddings, lengths, params, *, time_chunk=32):
    """doc_embeddings: [B, T, E] (batch_first, like PyTorch); lengths: [B] ints.

    Returns (projected [B, 256], (h_n [1, B, 128], c_n [1, B, 128])).  Jittable.
    """
    B, T, E = doc_embeddings.shape
    H, O = DOC_HIDDEN_LAYER_DIMENSION, OUTPUT_DIMENSION

    if E != EMBEDDING_DIM:
        raise ValueError(f"Embedding shape {[B, T, E]} did not match expected "
                         f"[<batch>, <max_len>, {EMBEDDING_DIM}]")
    # TODO(synk): the `T == max(lengths)` check from the PyTorch module is a host-side
    # precondition here; it was dropped to avoid a device->host sync and keep this jittable.

    # Pad batch to a sublane multiple (8) and time to a multiple of the chunk size.
    B_pad = ((B + 7) // 8) * 8
    Tt = int(min(time_chunk, T))
    T_pad = ((T + Tt - 1) // Tt) * Tt
    n_chunks = T_pad // Tt

    # Narrow to bf16 BEFORE the relayout so transpose/pad/reshape move half the bytes.
    x_tm = jnp.transpose(doc_embeddings.astype(jnp.bfloat16), (1, 0, 2))   # [T, B, E]
    x_tm = jnp.pad(x_tm, ((0, T_pad - T), (0, B_pad - B), (0, 0)))
    x2d = x_tm.reshape(T_pad * B_pad, E)                                   # [T_pad*B_pad, E]

    lengths_i32 = lengths.astype(jnp.int32)
    len_p = jnp.pad(lengths_i32, (0, B_pad - B)).reshape(B_pad, 1)
    max_len = jnp.max(lengths_i32).reshape(1)            # scalar-prefetched; no host sync

    # Gate columns permuted from PyTorch's (i, f, g, o) to (i, f, o, g) so the kernel can do
    # one contiguous sigmoid over 3H lanes.  Weights pre-transposed to (in, out); matmul
    # operands in bf16, biases in f32.
    perm = np.concatenate([np.arange(0, H), np.arange(H, 2 * H),
                           np.arange(3 * H, 4 * H), np.arange(2 * H, 3 * H)])
    wih_t = params["w_ih"][perm].T.astype(jnp.bfloat16)                    # [E, 4H]
    whh_t = params["w_hh"][perm].T.astype(jnp.bfloat16)                    # [H, 4H]
    bias = (params["b_ih"] + params["b_hh"])[perm].reshape(1, 4 * H).astype(jnp.float32)
    wproj_t = params["w_proj"].T.astype(jnp.bfloat16)                      # [H, O]
    bproj = params["b_proj"].reshape(1, O).astype(jnp.float32)

    const2d = lambda ci, ml: (0, 0)

    proj, h_n, c_n = pl.pallas_call(
        _lstm_proj_kernel,
        out_shape=(
            jax.ShapeDtypeStruct((B_pad, O), jnp.float32),
            jax.ShapeDtypeStruct((B_pad, H), jnp.float32),
            jax.ShapeDtypeStruct((B_pad, H), jnp.float32),
        ),
        grid_spec=pltpu.PrefetchScalarGridSpec(
            num_scalar_prefetch=1,                               # max_len -> SMEM
            grid=(n_chunks,),
            in_specs=[
                pl.BlockSpec((Tt * B_pad, E), lambda ci, ml: (ci, 0)),   # streamed x chunks
                pl.BlockSpec((B_pad, 1), const2d),                       # lengths (resident)
                pl.BlockSpec((E, 4 * H), const2d),                       # weights stay resident
                pl.BlockSpec((H, 4 * H), const2d),
                pl.BlockSpec((1, 4 * H), const2d),
                pl.BlockSpec((H, O), const2d),
                pl.BlockSpec((1, O), const2d),
            ],
            out_specs=(
                pl.BlockSpec((B_pad, O), const2d),
                pl.BlockSpec((B_pad, H), const2d),
                pl.BlockSpec((B_pad, H), const2d),
            ),
            scratch_shapes=[
                pltpu.VMEM((B_pad, H), jnp.float32),               # h carry
                pltpu.VMEM((B_pad, H), jnp.float32),               # c carry
                pltpu.VMEM((Tt * B_pad, 4 * H), jnp.bfloat16),     # precomputed input gates
            ],
        ),
        compiler_params=pltpu.CompilerParams(
            dimension_semantics=("arbitrary",),            # sequential recurrence over time
            vmem_limit_bytes=32 * 1024 * 1024,             # v5e scoped default is only 16 MiB
        ),
    )(max_len, x2d, len_p, wih_t, whh_t, bias, wproj_t, bproj)

    proj = proj[:B]
    h_n = h_n[:B]
    c_n = c_n[:B]
    # PyTorch h_n/c_n carry the (num_layers*num_directions,)=1 leading axis.
    return proj, (h_n[None], c_n[None])


def _reference_forward(doc_embeddings, lengths, params):
    """Pure-JAX f32 reference (lax.scan) for correctness checking."""
    B, T, E = doc_embeddings.shape
    H = DOC_HIDDEN_LAYER_DIMENSION
    x = jnp.transpose(doc_embeddings, (1, 0, 2)).astype(jnp.float32)
    wih_t, whh_t = params["w_ih"].T, params["w_hh"].T
    bias = params["b_ih"] + params["b_hh"]

    def step(carry, inp):
        h, c = carry
        x_t, t = inp
        gates = x_t @ wih_t + h @ whh_t + bias
        i = jax.nn.sigmoid(gates[:, 0 * H:1 * H])
        f = jax.nn.sigmoid(gates[:, 1 * H:2 * H])
        g = jnp.tanh(gates[:, 2 * H:3 * H])
        o = jax.nn.sigmoid(gates[:, 3 * H:4 * H])
        c_new = f * c + i * g
        h_new = o * jnp.tanh(c_new)
        valid = (lengths > t)[:, None]
        return (jnp.where(valid, h_new, h), jnp.where(valid, c_new, c)), None

    (h_n, c_n), _ = lax.scan(step, (jnp.zeros((B, H)), jnp.zeros((B, H))),
                             (x, jnp.arange(T)))
    proj = h_n @ params["w_proj"].T + params["b_proj"]
    return proj, (h_n[None], c_n[None])


def init_params(key):
    H, E, O = DOC_HIDDEN_LAYER_DIMENSION, EMBEDDING_DIM, OUTPUT_DIMENSION
    k = jax.random.split(key, 6)
    s_l = 1.0 / np.sqrt(H)   # PyTorch LSTM init scale
    s_p = 1.0 / np.sqrt(H)   # PyTorch Linear init scale (fan_in = H)
    return {
        "w_ih": jax.random.uniform(k[0], (4 * H, E), jnp.float32, -s_l, s_l),
        "w_hh": jax.random.uniform(k[1], (4 * H, H), jnp.float32, -s_l, s_l),
        "b_ih": jax.random.uniform(k[2], (4 * H,), jnp.float32, -s_l, s_l),
        "b_hh": jax.random.uniform(k[3], (4 * H,), jnp.float32, -s_l, s_l),
        "w_proj": jax.random.uniform(k[4], (O, H), jnp.float32, -s_p, s_p),
        "b_proj": jax.random.uniform(k[5], (O,), jnp.float32, -s_p, s_p),
    }


if __name__ == "__main__":
    key = jax.random.PRNGKey(0)
    k_param, k_x = jax.random.split(key)

    B, T = 2, 8
    params = init_params(k_param)
    doc_embeddings = jax.random.normal(k_x, (B, T, EMBEDDING_DIM), jnp.float32)
    lengths = jnp.array([8, 5], dtype=jnp.int32)   # max(lengths) == T, as the module requires

    proj_ref, (h_ref, c_ref) = _reference_forward(doc_embeddings, lengths, params)

    # Default time_chunk (32 -> Tt=min(32,T)=8, grid=(1,)) and a chunked config (time_chunk=4,
    # grid=(2,)) that exercises the pipelined x stream and the h/c carry across grid steps.
    for tc in (32, 4):
        fwd = jax.jit(functools.partial(doc_projector_forward, time_chunk=tc))
        proj, (h_n, c_n) = fwd(doc_embeddings, lengths, params)
        jax.block_until_ready((proj, h_n, c_n))

        # Sanity check against pure-JAX f32 reference (bf16 matmul operands -> loose tolerance).
        np.testing.assert_allclose(np.asarray(proj), np.asarray(proj_ref), rtol=3e-2, atol=3e-2)
        np.testing.assert_allclose(np.asarray(h_n), np.asarray(h_ref), rtol=3e-2, atol=3e-2)
        np.testing.assert_allclose(np.asarray(c_n), np.asarray(c_ref), rtol=3e-2, atol=3e-2)

        assert proj.shape == (B, OUTPUT_DIMENSION)
        assert h_n.shape == (1, B, DOC_HIDDEN_LAYER_DIMENSION)
        assert c_n.shape == (1, B, DOC_HIDDEN_LAYER_DIMENSION)

    print("KERNEL_OK")
</pallas_src>

<mosaic_0001>
module attributes {stable_mosaic.version = 11 : i64} {
  func.func @_lstm_proj_kernel(%arg0: i32, %arg1: memref<1xi32, #tpu.memory_space<smem>>, %arg2: memref<64x64xbf16, #tpu.memory_space<vmem>>, %arg3: memref<8x1xi32, #tpu.memory_space<vmem>>, %arg4: memref<64x512xbf16, #tpu.memory_space<vmem>>, %arg5: memref<128x512xbf16, #tpu.memory_space<vmem>>, %arg6: memref<1x512xf32, #tpu.memory_space<vmem>>, %arg7: memref<128x256xbf16, #tpu.memory_space<vmem>>, %arg8: memref<1x256xf32, #tpu.memory_space<vmem>>, %arg9: memref<8x256xf32, #tpu.memory_space<vmem>>, %arg10: memref<8x128xf32, #tpu.memory_space<vmem>>, %arg11: memref<8x128xf32, #tpu.memory_space<vmem>>, %arg12: memref<8x128xf32, #tpu.memory_space<vmem>>, %arg13: memref<8x128xf32, #tpu.memory_space<vmem>>, %arg14: memref<64x512xbf16, #tpu.memory_space<vmem>>) attributes {dimension_semantics = [#tpu.dimension_semantics<arbitrary>], iteration_bounds = array<i64: 1>, scalar_prefetch = 1 : i64, scratch_operands = 3 : i64, tpu.core_type = #tpu.core_type<tc>, window_params = [{transform_indices = @transform_0, window_bounds = array<i64: 64, 64>}, {pipeline_mode = #tpu.pipeline_mode<synchronous>, transform_indices = @transform_1, window_bounds = array<i64: 8, 1>}, {pipeline_mode = #tpu.pipeline_mode<synchronous>, transform_indices = @transform_2, window_bounds = array<i64: 64, 512>}, {pipeline_mode = #tpu.pipeline_mode<synchronous>, transform_indices = @transform_3, window_bounds = array<i64: 128, 512>}, {pipeline_mode = #tpu.pipeline_mode<synchronous>, transform_indices = @transform_4, window_bounds = array<i64: 1, 512>}, {pipeline_mode = #tpu.pipeline_mode<synchronous>, transform_indices = @transform_5, window_bounds = array<i64: 128, 256>}, {pipeline_mode = #tpu.pipeline_mode<synchronous>, transform_indices = @transform_6, window_bounds = array<i64: 1, 256>}, {pipeline_mode = #tpu.pipeline_mode<synchronous>, transform_indices = @transform_7, window_bounds = array<i64: 8, 256>}, {pipeline_mode = #tpu.pipeline_mode<synchronous>, transform_indices = @transform_8, window_bounds = array<i64: 8, 128>}, {pipeline_mode = #tpu.pipeline_mode<synchronous>, transform_indices = @transform_9, window_bounds = array<i64: 8, 128>}]} {
    %c8_i32 = arith.constant 8 : i32
    %0 = arith.muli %arg0, %c8_i32 : i32
    %c0_i32 = arith.constant 0 : i32
    %1 = arith.cmpi eq, %arg0, %c0_i32 : i32
    %2 = arith.extui %1 : i1 to i32
    %c0_i32_0 = arith.constant 0 : i32
    %3 = arith.cmpi ne, %2, %c0_i32_0 : i32
    scf.if %3 {
      %cst = arith.constant 0.000000e+00 : f32
      %11 = vector.broadcast %cst : f32 to vector<8x128xf32>
      %c0_4 = arith.constant 0 : index
      %c0_5 = arith.constant 0 : index
      %12 = vector.load %arg12[%c0_4, %c0_5] : memref<8x128xf32, #tpu.memory_space<vmem>>, vector<8x128xf32>
      tpu.vector_store %arg12[%c0_4, %c0_5], %11 {strides = array<i32>} : memref<8x128xf32, #tpu.memory_space<vmem>>, vector<8x128xf32>,
      %cst_6 = arith.constant 0.000000e+00 : f32
      %13 = vector.broadcast %cst_6 : f32 to vector<8x128xf32>
      %c0_7 = arith.constant 0 : index
      %c0_8 = arith.constant 0 : index
      %14 = vector.load %arg13[%c0_7, %c0_8] : memref<8x128xf32, #tpu.memory_space<vmem>>, vector<8x128xf32>
      tpu.vector_store %arg13[%c0_7, %c0_8], %13 {strides = array<i32>} : memref<8x128xf32, #tpu.memory_space<vmem>>, vector<8x128xf32>,
    } else {
    }
    %c0 = arith.constant 0 : index
    %4 = memref.load %arg1[%c0] : memref<1xi32, #tpu.memory_space<smem>>
    %5 = arith.cmpi slt, %0, %4 : i32
    %6 = arith.extui %5 : i1 to i32
    %c0_i32_1 = arith.constant 0 : i32
    %7 = arith.cmpi ne, %6, %c0_i32_1 : i32
    scf.if %7 {
      %c0_4 = arith.constant 0 : index
      %c0_5 = arith.constant 0 : index
      %11 = vector.load %arg2[%c0_4, %c0_5] : memref<64x64xbf16, #tpu.memory_space<vmem>>, vector<64x64xbf16>
      %c0_6 = arith.constant 0 : index
      %c0_7 = arith.constant 0 : index
      %12 = vector.load %arg4[%c0_6, %c0_7] : memref<64x512xbf16, #tpu.memory_space<vmem>>, vector<64x512xbf16>
      %cst = arith.constant dense<0.000000e+00> : vector<64x512xf32>
      %13 = tpu.matmul %11, %12, %cst {dimension_numbers = #tpu.dot_dimension_numbers<[1], [0], [0], [1], [0, 0, 1, 1], [], []>} : vector<64x64xbf16>, vector<64x512xbf16>, vector<64x512xf32> -> vector<64x512xf32>
      %c0_8 = arith.constant 0 : index
      %c0_9 = arith.constant 0 : index
      %14 = vector.load %arg6[%c0_8, %c0_9] : memref<1x512xf32, #tpu.memory_space<vmem>>, vector<1x512xf32>
      %15 = vector.broadcast %14 : vector<1x512xf32> to vector<64x512xf32>
      %16 = arith.addf %13, %15 : vector<64x512xf32>
      %17 = arith.truncf %16 : vector<64x512xf32> to vector<64x512xbf16>
      %c0_10 = arith.constant 0 : index
      %c0_11 = arith.constant 0 : index
      %18 = vector.load %arg14[%c0_10, %c0_11] : memref<64x512xbf16, #tpu.memory_space<vmem>>, vector<64x512xbf16>
      tpu.vector_store %arg14[%c0_10, %c0_11], %17 {strides = array<i32>} : memref<64x512xbf16, #tpu.memory_space<vmem>>, vector<64x512xbf16>,
      %c0_12 = arith.constant 0 : index
      %c0_13 = arith.constant 0 : index
      %19 = vector.load %arg5[%c0_12, %c0_13] : memref<128x512xbf16, #tpu.memory_space<vmem>>, vector<128x512xbf16>
      %c0_14 = arith.constant 0 : index
      %c0_15 = arith.constant 0 : index
      %20 = vector.load %arg3[%c0_14, %c0_15] : memref<8x1xi32, #tpu.memory_space<vmem>>, vector<8x1xi32>
      %21 = vector.broadcast %0 : i32 to vector<8x1xi32>
      %22 = arith.subi %20, %21 : vector<8x1xi32>
      %23 = vector.shape_cast %22 : vector<8x1xi32> to vector<8x1xi32>
      %24 = vector.broadcast %23 : vector<8x1xi32> to vector<8x128xi32>
      %c0_16 = arith.constant 0 : index
      %c0_17 = arith.constant 0 : index
      %25 = vector.load %arg12[%c0_16, %c0_17] : memref<8x128xf32, #tpu.memory_space<vmem>>, vector<8x128xf32>
      %c0_18 = arith.constant 0 : index
      %c0_19 = arith.constant 0 : index
      %26 = vector.load %arg13[%c0_18, %c0_19] : memref<8x128xf32, #tpu.memory_space<vmem>>, vector<8x128xf32>
      %c0_i32_20 = arith.constant 0 : i32
      %c8_i32_21 = arith.constant 8 : i32
      %27 = arith.muli %c0_i32_20, %c8_i32_21 : i32
      %28 = tpu.assume_multiple %27, 8 : i32
      %29 = arith.index_cast %28 : i32 to index
      %c0_22 = arith.constant 0 : index
      %30 = vector.load %arg14[%29, %c0_22] : memref<64x512xbf16, #tpu.memory_space<vmem>>, vector<8x512xbf16>
      %31 = arith.extf %30 : vector<8x512xbf16> to vector<8x512xf32>
      %32 = arith.truncf %25 : vector<8x128xf32> to vector<8x128xbf16>
      %cst_23 = arith.constant dense<0.000000e+00> : vector<8x512xf32>
      %33 = tpu.matmul %32, %19, %cst_23 {dimension_numbers = #tpu.dot_dimension_numbers<[1], [0], [0], [1], [0, 0, 1, 1], [], []>} : vector<8x128xbf16>, vector<128x512xbf16>, vector<8x512xf32> -> vector<8x512xf32>
      %34 = arith.addf %31, %33 : vector<8x512xf32>
      %35 = vector.extract_strided_slice %34 {offsets = [0, 0], sizes = [8, 384], strides = [1, 1]} : vector<8x512xf32> to vector<8x384xf32>
      %36 = arith.negf %35 : vector<8x384xf32>
      %37 = math.exp %36 : vector<8x384xf32>
      %cst_24 = arith.constant 1.000000e+00 : f32
      %38 = vector.broadcast %cst_24 : f32 to vector<8x384xf32>
      %39 = arith.addf %38, %37 : vector<8x384xf32>
      %40 = arith.divf %38, %39 : vector<8x384xf32>
      %41 = vector.extract_strided_slice %40 {offsets = [0, 0], sizes = [8, 128], strides = [1, 1]} : vector<8x384xf32> to vector<8x128xf32>
      %42 = vector.extract_strided_slice %40 {offsets = [0, 128], sizes = [8, 128], strides = [1, 1]} : vector<8x384xf32> to vector<8x128xf32>
      %43 = vector.extract_strided_slice %40 {offsets = [0, 256], sizes = [8, 128], strides = [1, 1]} : vector<8x384xf32> to vector<8x128xf32>
      %44 = vector.extract_strided_slice %34 {offsets = [0, 384], sizes = [8, 128], strides = [1, 1]} : vector<8x512xf32> to vector<8x128xf32>
      %45 = math.tanh %44 : vector<8x128xf32>
      %46 = arith.mulf %42, %26 : vector<8x128xf32>
      %47 = arith.mulf %41, %45 : vector<8x128xf32>
      %48 = arith.addf %46, %47 : vector<8x128xf32>
      %49 = math.tanh %48 : vector<8x128xf32>
      %50 = arith.mulf %43, %49 : vector<8x128xf32>
      %51 = vector.broadcast %c0_i32_20 : i32 to vector<8x128xi32>
      %52 = arith.cmpi sgt, %24, %51 : vector<8x128xi32>
      %53 = arith.select %52, %50, %25 : vector<8x128xi1>, vector<8x128xf32>
      %54 = arith.select %52, %48, %26 : vector<8x128xi1>, vector<8x128xf32>
      %c1_i32 = arith.constant 1 : i32
      %c8_i32_25 = arith.constant 8 : i32
      %55 = arith.muli %c1_i32, %c8_i32_25 : i32
      %56 = tpu.assume_multiple %55, 8 : i32
      %57 = arith.index_cast %56 : i32 to index
      %c0_26 = arith.constant 0 : index
      %58 = vector.load %arg14[%57, %c0_26] : memref<64x512xbf16, #tpu.memory_space<vmem>>, vector<8x512xbf16>
      %59 = arith.extf %58 : vector<8x512xbf16> to vector<8x512xf32>
      %60 = arith.truncf %53 : vector<8x128xf32> to vector<8x128xbf16>
      %cst_27 = arith.constant dense<0.000000e+00> : vector<8x512xf32>
      %61 = tpu.matmul %60, %19, %cst_27 {dimension_numbers = #tpu.dot_dimension_numbers<[1], [0], [0], [1], [0, 0, 1, 1], [], []>} : vector<8x128xbf16>, vector<128x512xbf16>, vector<8x512xf32> -> vector<8x512xf32>
      %62 = arith.addf %59, %61 : vector<8x512xf32>
      %63 = vector.extract_strided_slice %62 {offsets = [0, 0], sizes = [8, 384], strides = [1, 1]} : vector<8x512xf32> to vector<8x384xf32>
      %64 = arith.negf %63 : vector<8x384xf32>
      %65 = math.exp %64 : vector<8x384xf32>
      %cst_28 = arith.constant 1.000000e+00 : f32
      %66 = vector.broadcast %cst_28 : f32 to vector<8x384xf32>
      %67 = arith.addf %66, %65 : vector<8x384xf32>
      %68 = arith.divf %66, %67 : vector<8x384xf32>
      %69 = vector.extract_strided_slice %68 {offsets = [0, 0], sizes = [8, 128], strides = [1, 1]} : vector<8x384xf32> to vector<8x128xf32>
      %70 = vector.extract_strided_slice %68 {offsets = [0, 128], sizes = [8, 128], strides = [1, 1]} : vector<8x384xf32> to vector<8x128xf32>
      %71 = vector.extract_strided_slice %68 {offsets = [0, 256], sizes = [8, 128], strides = [1, 1]} : vector<8x384xf32> to vector<8x128xf32>
      %72 = vector.extract_strided_slice %62 {offsets = [0, 384], sizes = [8, 128], strides = [1, 1]} : vector<8x512xf32> to vector<8x128xf32>
      %73 = math.tanh %72 : vector<8x128xf32>
      %74 = arith.mulf %70, %54 : vector<8x128xf32>
      %75 = arith.mulf %69, %73 : vector<8x128xf32>
      %76 = arith.addf %74, %75 : vector<8x128xf32>
      %77 = math.tanh %76 : vector<8x128xf32>
      %78 = arith.mulf %71, %77 : vector<8x128xf32>
      %79 = vector.broadcast %c1_i32 : i32 to vector<8x128xi32>
      %80 = arith.cmpi sgt, %24, %79 : vector<8x128xi32>
      %81 = arith.select %80, %78, %53 : vector<8x128xi1>, vector<8x128xf32>
      %82 = arith.select %80, %76, %54 : vector<8x128xi1>, vector<8x128xf32>
      %c2_i32 = arith.constant 2 : i32
      %c8_i32_29 = arith.constant 8 : i32
      %83 = arith.muli %c2_i32, %c8_i32_29 : i32
      %84 = tpu.assume_multiple %83, 8 : i32
      %85 = arith.index_cast %84 : i32 to index
      %c0_30 = arith.constant 0 : index
      %86 = vector.load %arg14[%85, %c0_30] : memref<64x512xbf16, #tpu.memory_space<vmem>>, vector<8x512xbf16>
      %87 = arith.extf %86 : vector<8x512xbf16> to vector<8x512xf32>
      %88 = arith.truncf %81 : vector<8x128xf32> to vector<8x128xbf16>
      %cst_31 = arith.constant dense<0.000000e+00> : vector<8x512xf32>
      %89 = tpu.matmul %88, %19, %cst_31 {dimension_numbers = #tpu.dot_dimension_numbers<[1], [0], [0], [1], [0, 0, 1, 1], [], []>} : vector<8x128xbf16>, vector<128x512xbf16>, vector<8x512xf32> -> vector<8x512xf32>
      %90 = arith.addf %87, %89 : vector<8x512xf32>
      %91 = vector.extract_strided_slice %90 {offsets = [0, 0], sizes = [8, 384], strides = [1, 1]} : vector<8x512xf32> to vector<8x384xf32>
      %92 = arith.negf %91 : vector<8x384xf32>
      %93 = math.exp %92 : vector<8x384xf32>
      %cst_32 = arith.constant 1.000000e+00 : f32
      %94 = vector.broadcast %cst_32 : f32 to vector<8x384xf32>
      %95 = arith.addf %94, %93 : vector<8x384xf32>
      %96 = arith.divf %94, %95 : vector<8x384xf32>
      %97 = vector.extract_strided_slice %96 {offsets = [0, 0], sizes = [8, 128], strides = [1, 1]} : vector<8x384xf32> to vector<8x128xf32>
      %98 = vector.extract_strided_slice %96 {offsets = [0, 128], sizes = [8, 128], strides = [1, 1]} : vector<8x384xf32> to vector<8x128xf32>
      %99 = vector.extract_strided_slice %96 {offsets = [0, 256], sizes = [8, 128], strides = [1, 1]} : vector<8x384xf32> to vector<8x128xf32>
      %100 = vector.extract_strided_slice %90 {offsets = [0, 384], sizes = [8, 128], strides = [1, 1]} : vector<8x512xf32> to vector<8x128xf32>
      %101 = math.tanh %100 : vector<8x128xf32>
      %102 = arith.mulf %98, %82 : vector<8x128xf32>
      %103 = arith.mulf %97, %101 : vector<8x128xf32>
      %104 = arith.addf %102, %103 : vector<8x128xf32>
      %105 = math.tanh %104 : vector<8x128xf32>
      %106 = arith.mulf %99, %105 : vector<8x128xf32>
      %107 = vector.broadcast %c2_i32 : i32 to vector<8x128xi32>
      %108 = arith.cmpi sgt, %24, %107 : vector<8x128xi32>
      %109 = arith.select %108, %106, %81 : vector<8x128xi1>, vector<8x128xf32>
      %110 = arith.select %108, %104, %82 : vector<8x128xi1>, vector<8x128xf32>
      %c3_i32 = arith.constant 3 : i32
      %c8_i32_33 = arith.constant 8 : i32
      %111 = arith.muli %c3_i32, %c8_i32_33 : i32
      %112 = tpu.assume_multiple %111, 8 : i32
      %113 = arith.index_cast %112 : i32 to index
      %c0_34 = arith.constant 0 : index
      %114 = vector.load %arg14[%113, %c0_34] : memref<64x512xbf16, #tpu.memory_space<vmem>>, vector<8x512xbf16>
      %115 = arith.extf %114 : vector<8x512xbf16> to vector<8x512xf32>
      %116 = arith.truncf %109 : vector<8x128xf32> to vector<8x128xbf16>
      %cst_35 = arith.constant dense<0.000000e+00> : vector<8x512xf32>
      %117 = tpu.matmul %116, %19, %cst_35 {dimension_numbers = #tpu.dot_dimension_numbers<[1], [0], [0], [1], [0, 0, 1, 1], [], []>} : vector<8x128xbf16>, vector<128x512xbf16>, vector<8x512xf32> -> vector<8x512xf32>
      %118 = arith.addf %115, %117 : vector<8x512xf32>
      %119 = vector.extract_strided_slice %118 {offsets = [0, 0], sizes = [8, 384], strides = [1, 1]} : vector<8x512xf32> to vector<8x384xf32>
      %120 = arith.negf %119 : vector<8x384xf32>
      %121 = math.exp %120 : vector<8x384xf32>
      %cst_36 = arith.constant 1.000000e+00 : f32
      %122 = vector.broadcast %cst_36 : f32 to vector<8x384xf32>
      %123 = arith.addf %122, %121 : vector<8x384xf32>
      %124 = arith.divf %122, %123 : vector<8x384xf32>
      %125 = vector.extract_strided_slice %124 {offsets = [0, 0], sizes = [8, 128], strides = [1, 1]} : vector<8x384xf32> to vector<8x128xf32>
      %126 = vector.extract_strided_slice %124 {offsets = [0, 128], sizes = [8, 128], strides = [1, 1]} : vector<8x384xf32> to vector<8x128xf32>
      %127 = vector.extract_strided_slice %124 {offsets = [0, 256], sizes = [8, 128], strides = [1, 1]} : vector<8x384xf32> to vector<8x128xf32>
      %128 = vector.extract_strided_slice %118 {offsets = [0, 384], sizes = [8, 128], strides = [1, 1]} : vector<8x512xf32> to vector<8x128xf32>
      %129 = math.tanh %128 : vector<8x128xf32>
      %130 = arith.mulf %126, %110 : vector<8x128xf32>
      %131 = arith.mulf %125, %129 : vector<8x128xf32>
      %132 = arith.addf %130, %131 : vector<8x128xf32>
      %133 = math.tanh %132 : vector<8x128xf32>
      %134 = arith.mulf %127, %133 : vector<8x128xf32>
      %135 = vector.broadcast %c3_i32 : i32 to vector<8x128xi32>
      %136 = arith.cmpi sgt, %24, %135 : vector<8x128xi32>
      %137 = arith.select %136, %134, %109 : vector<8x128xi1>, vector<8x128xf32>
      %138 = arith.select %136, %132, %110 : vector<8x128xi1>, vector<8x128xf32>
      %c4_i32 = arith.constant 4 : i32
      %c8_i32_37 = arith.constant 8 : i32
      %139 = arith.muli %c4_i32, %c8_i32_37 : i32
      %140 = tpu.assume_multiple %139, 8 : i32
      %141 = arith.index_cast %140 : i32 to index
      %c0_38 = arith.constant 0 : index
      %142 = vector.load %arg14[%141, %c0_38] : memref<64x512xbf16, #tpu.memory_space<vmem>>, vector<8x512xbf16>
      %143 = arith.extf %142 : vector<8x512xbf16> to vector<8x512xf32>
      %144 = arith.truncf %137 : vector<8x128xf32> to vector<8x128xbf16>
      %cst_39 = arith.constant dense<0.000000e+00> : vector<8x512xf32>
      %145 = tpu.matmul %144, %19, %cst_39 {dimension_numbers = #tpu.dot_dimension_numbers<[1], [0], [0], [1], [0, 0, 1, 1], [], []>} : vector<8x128xbf16>, vector<128x512xbf16>, vector<8x512xf32> -> vector<8x512xf32>
      %146 = arith.addf %143, %145 : vector<8x512xf32>
      %147 = vector.extract_strided_slice %146 {offsets = [0, 0], sizes = [8, 384], strides = [1, 1]} : vector<8x512xf32> to vector<8x384xf32>
      %148 = arith.negf %147 : vector<8x384xf32>
      %149 = math.exp %148 : vector<8x384xf32>
      %cst_40 = arith.constant 1.000000e+00 : f32
      %150 = vector.broadcast %cst_40 : f32 to vector<8x384xf32>
      %151 = arith.addf %150, %149 : vector<8x384xf32>
      %152 = arith.divf %150, %151 : vector<8x384xf32>
      %153 = vector.extract_strided_slice %152 {offsets = [0, 0], sizes = [8, 128], strides = [1, 1]} : vector<8x384xf32> to vector<8x128xf32>
      %154 = vector.extract_strided_slice %152 {offsets = [0, 128], sizes = [8, 128], strides = [1, 1]} : vector<8x384xf32> to vector<8x128xf32>
      %155 = vector.extract_strided_slice %152 {offsets = [0, 256], sizes = [8, 128], strides = [1, 1]} : vector<8x384xf32> to vector<8x128xf32>
      %156 = vector.extract_strided_slice %146 {offsets = [0, 384], sizes = [8, 128], strides = [1, 1]} : vector<8x512xf32> to vector<8x128xf32>
      %157 = math.tanh %156 : vector<8x128xf32>
      %158 = arith.mulf %154, %138 : vector<8x128xf32>
      %159 = arith.mulf %153, %157 : vector<8x128xf32>
      %160 = arith.addf %158, %159 : vector<8x128xf32>
      %161 = math.tanh %160 : vector<8x128xf32>
      %162 = arith.mulf %155, %161 : vector<8x128xf32>
      %163 = vector.broadcast %c4_i32 : i32 to vector<8x128xi32>
      %164 = arith.cmpi sgt, %24, %163 : vector<8x128xi32>
      %165 = arith.select %164, %162, %137 : vector<8x128xi1>, vector<8x128xf32>
      %166 = arith.select %164, %160, %138 : vector<8x128xi1>, vector<8x128xf32>
      %c5_i32 = arith.constant 5 : i32
      %c8_i32_41 = arith.constant 8 : i32
      %167 = arith.muli %c5_i32, %c8_i32_41 : i32
      %168 = tpu.assume_multiple %167, 8 : i32
      %169 = arith.index_cast %168 : i32 to index
      %c0_42 = arith.constant 0 : index
      %170 = vector.load %arg14[%169, %c0_42] : memref<64x512xbf16, #tpu.memory_space<vmem>>, vector<8x512xbf16>
      %171 = arith.extf %170 : vector<8x512xbf16> to vector<8x512xf32>
      %172 = arith.truncf %165 : vector<8x128xf32> to vector<8x128xbf16>
      %cst_43 = arith.constant dense<0.000000e+00> : vector<8x512xf32>
      %173 = tpu.matmul %172, %19, %cst_43 {dimension_numbers = #tpu.dot_dimension_numbers<[1], [0], [0], [1], [0, 0, 1, 1], [], []>} : vector<8x128xbf16>, vector<128x512xbf16>, vector<8x512xf32> -> vector<8x512xf32>
      %174 = arith.addf %171, %173 : vector<8x512xf32>
      %175 = vector.extract_strided_slice %174 {offsets = [0, 0], sizes = [8, 384], strides = [1, 1]} : vector<8x512xf32> to vector<8x384xf32>
      %176 = arith.negf %175 : vector<8x384xf32>
      %177 = math.exp %176 : vector<8x384xf32>
      %cst_44 = arith.constant 1.000000e+00 : f32
      %178 = vector.broadcast %cst_44 : f32 to vector<8x384xf32>
      %179 = arith.addf %178, %177 : vector<8x384xf32>
      %180 = arith.divf %178, %179 : vector<8x384xf32>
      %181 = vector.extract_strided_slice %180 {offsets = [0, 0], sizes = [8, 128], strides = [1, 1]} : vector<8x384xf32> to vector<8x128xf32>
      %182 = vector.extract_strided_slice %180 {offsets = [0, 128], sizes = [8, 128], strides = [1, 1]} : vector<8x384xf32> to vector<8x128xf32>
      %183 = vector.extract_strided_slice %180 {offsets = [0, 256], sizes = [8, 128], strides = [1, 1]} : vector<8x384xf32> to vector<8x128xf32>
      %184 = vector.extract_strided_slice %174 {offsets = [0, 384], sizes = [8, 128], strides = [1, 1]} : vector<8x512xf32> to vector<8x128xf32>
      %185 = math.tanh %184 : vector<8x128xf32>
      %186 = arith.mulf %182, %166 : vector<8x128xf32>
      %187 = arith.mulf %181, %185 : vector<8x128xf32>
      %188 = arith.addf %186, %187 : vector<8x128xf32>
      %189 = math.tanh %188 : vector<8x128xf32>
      %190 = arith.mulf %183, %189 : vector<8x128xf32>
      %191 = vector.broadcast %c5_i32 : i32 to vector<8x128xi32>
      %192 = arith.cmpi sgt, %24, %191 : vector<8x128xi32>
      %193 = arith.select %192, %190, %165 : vector<8x128xi1>, vector<8x128xf32>
      %194 = arith.select %192, %188, %166 : vector<8x128xi1>, vector<8x128xf32>
      %c6_i32 = arith.constant 6 : i32
      %c8_i32_45 = arith.constant 8 : i32
      %195 = arith.muli %c6_i32, %c8_i32_45 : i32
      %196 = tpu.assume_multiple %195, 8 : i32
      %197 = arith.index_cast %196 : i32 to index
      %c0_46 = arith.constant 0 : index
      %198 = vector.load %arg14[%197, %c0_46] : memref<64x512xbf16, #tpu.memory_space<vmem>>, vector<8x512xbf16>
      %199 = arith.extf %198 : vector<8x512xbf16> to vector<8x512xf32>
      %200 = arith.truncf %193 : vector<8x128xf32> to vector<8x128xbf16>
      %cst_47 = arith.constant dense<0.000000e+00> : vector<8x512xf32>
      %201 = tpu.matmul %200, %19, %cst_47 {dimension_numbers = #tpu.dot_dimension_numbers<[1], [0], [0], [1], [0, 0, 1, 1], [], []>} : vector<8x128xbf16>, vector<128x512xbf16>, vector<8x512xf32> -> vector<8x512xf32>
      %202 = arith.addf %199, %201 : vector<8x512xf32>
      %203 = vector.extract_strided_slice %202 {offsets = [0, 0], sizes = [8, 384], strides = [1, 1]} : vector<8x512xf32> to vector<8x384xf32>
      %204 = arith.negf %203 : vector<8x384xf32>
      %205 = math.exp %204 : vector<8x384xf32>
      %cst_48 = arith.constant 1.000000e+00 : f32
      %206 = vector.broadcast %cst_48 : f32 to vector<8x384xf32>
      %207 = arith.addf %206, %205 : vector<8x384xf32>
      %208 = arith.divf %206, %207 : vector<8x384xf32>
      %209 = vector.extract_strided_slice %208 {offsets = [0, 0], sizes = [8, 128], strides = [1, 1]} : vector<8x384xf32> to vector<8x128xf32>
      %210 = vector.extract_strided_slice %208 {offsets = [0, 128], sizes = [8, 128], strides = [1, 1]} : vector<8x384xf32> to vector<8x128xf32>
      %211 = vector.extract_strided_slice %208 {offsets = [0, 256], sizes = [8, 128], strides = [1, 1]} : vector<8x384xf32> to vector<8x128xf32>
      %212 = vector.extract_strided_slice %202 {offsets = [0, 384], sizes = [8, 128], strides = [1, 1]} : vector<8x512xf32> to vector<8x128xf32>
      %213 = math.tanh %212 : vector<8x128xf32>
      %214 = arith.mulf %210, %194 : vector<8x128xf32>
      %215 = arith.mulf %209, %213 : vector<8x128xf32>
      %216 = arith.addf %214, %215 : vector<8x128xf32>
      %217 = math.tanh %216 : vector<8x128xf32>
      %218 = arith.mulf %211, %217 : vector<8x128xf32>
      %219 = vector.broadcast %c6_i32 : i32 to vector<8x128xi32>
      %220 = arith.cmpi sgt, %24, %219 : vector<8x128xi32>
      %221 = arith.select %220, %218, %193 : vector<8x128xi1>, vector<8x128xf32>
      %222 = arith.select %220, %216, %194 : vector<8x128xi1>, vector<8x128xf32>
      %c7_i32 = arith.constant 7 : i32
      %c8_i32_49 = arith.constant 8 : i32
      %223 = arith.muli %c7_i32, %c8_i32_49 : i32
      %224 = tpu.assume_multiple %223, 8 : i32
      %225 = arith.index_cast %224 : i32 to index
      %c0_50 = arith.constant 0 : index
      %226 = vector.load %arg14[%225, %c0_50] : memref<64x512xbf16, #tpu.memory_space<vmem>>, vector<8x512xbf16>
      %227 = arith.extf %226 : vector<8x512xbf16> to vector<8x512xf32>
      %228 = arith.truncf %221 : vector<8x128xf32> to vector<8x128xbf16>
      %cst_51 = arith.constant dense<0.000000e+00> : vector<8x512xf32>
      %229 = tpu.matmul %228, %19, %cst_51 {dimension_numbers = #tpu.dot_dimension_numbers<[1], [0], [0], [1], [0, 0, 1, 1], [], []>} : vector<8x128xbf16>, vector<128x512xbf16>, vector<8x512xf32> -> vector<8x512xf32>
      %230 = arith.addf %227, %229 : vector<8x512xf32>
      %231 = vector.extract_strided_slice %230 {offsets = [0, 0], sizes = [8, 384], strides = [1, 1]} : vector<8x512xf32> to vector<8x384xf32>
      %232 = arith.negf %231 : vector<8x384xf32>
      %233 = math.exp %232 : vector<8x384xf32>
      %cst_52 = arith.constant 1.000000e+00 : f32
      %234 = vector.broadcast %cst_52 : f32 to vector<8x384xf32>
      %235 = arith.addf %234, %233 : vector<8x384xf32>
      %236 = arith.divf %234, %235 : vector<8x384xf32>
      %237 = vector.extract_strided_slice %236 {offsets = [0, 0], sizes = [8, 128], strides = [1, 1]} : vector<8x384xf32> to vector<8x128xf32>
      %238 = vector.extract_strided_slice %236 {offsets = [0, 128], sizes = [8, 128], strides = [1, 1]} : vector<8x384xf32> to vector<8x128xf32>
      %239 = vector.extract_strided_slice %236 {offsets = [0, 256], sizes = [8, 128], strides = [1, 1]} : vector<8x384xf32> to vector<8x128xf32>
      %240 = vector.extract_strided_slice %230 {offsets = [0, 384], sizes = [8, 128], strides = [1, 1]} : vector<8x512xf32> to vector<8x128xf32>
      %241 = math.tanh %240 : vector<8x128xf32>
      %242 = arith.mulf %238, %222 : vector<8x128xf32>
      %243 = arith.mulf %237, %241 : vector<8x128xf32>
      %244 = arith.addf %242, %243 : vector<8x128xf32>
      %245 = math.tanh %244 : vector<8x128xf32>
      %246 = arith.mulf %239, %245 : vector<8x128xf32>
      %247 = vector.broadcast %c7_i32 : i32 to vector<8x128xi32>
      %248 = arith.cmpi sgt, %24, %247 : vector<8x128xi32>
      %249 = arith.select %248, %246, %221 : vector<8x128xi1>, vector<8x128xf32>
      %250 = arith.select %248, %244, %222 : vector<8x128xi1>, vector<8x128xf32>
      %c8_i32_53 = arith.constant 8 : i32
      %c0_54 = arith.constant 0 : index
      %c0_55 = arith.constant 0 : index
      %251 = vector.load %arg12[%c0_54, %c0_55] : memref<8x128xf32, #tpu.memory_space<vmem>>, vector<8x128xf32>
      tpu.vector_store %arg12[%c0_54, %c0_55], %249 {strides = array<i32>} : memref<8x128xf32, #tpu.memory_space<vmem>>, vector<8x128xf32>,
      %c0_56 = arith.constant 0 : index
      %c0_57 = arith.constant 0 : index
      %252 = vector.load %arg13[%c0_56, %c0_57] : memref<8x128xf32, #tpu.memory_space<vmem>>, vector<8x128xf32>
      tpu.vector_store %arg13[%c0_56, %c0_57], %250 {strides = array<i32>} : memref<8x128xf32, #tpu.memory_space<vmem>>, vector<8x128xf32>,
    } else {
    }
    %c0_i32_2 = arith.constant 0 : i32
    %8 = arith.cmpi eq, %arg0, %c0_i32_2 : i32
    %9 = arith.extui %8 : i1 to i32
    %c0_i32_3 = arith.constant 0 : i32
    %10 = arith.cmpi ne, %9, %c0_i32_3 : i32
    scf.if %10 {
      %c0_4 = arith.constant 0 : index
      %c0_5 = arith.constant 0 : index
      %11 = vector.load %arg12[%c0_4, %c0_5] : memref<8x128xf32, #tpu.memory_space<vmem>>, vector<8x128xf32>
      %c0_6 = arith.constant 0 : index
      %c0_7 = arith.constant 0 : index
      %12 = vector.load %arg10[%c0_6, %c0_7] : memref<8x128xf32, #tpu.memory_space<vmem>>, vector<8x128xf32>
      tpu.vector_store %arg10[%c0_6, %c0_7], %11 {strides = array<i32>} : memref<8x128xf32, #tpu.memory_space<vmem>>, vector<8x128xf32>,
      %c0_8 = arith.constant 0 : index
      %c0_9 = arith.constant 0 : index
      %13 = vector.load %arg13[%c0_8, %c0_9] : memref<8x128xf32, #tpu.memory_space<vmem>>, vector<8x128xf32>
      %c0_10 = arith.constant 0 : index
      %c0_11 = arith.constant 0 : index
      %14 = vector.load %arg11[%c0_10, %c0_11] : memref<8x128xf32, #tpu.memory_space<vmem>>, vector<8x128xf32>
      tpu.vector_store %arg11[%c0_10, %c0_11], %13 {strides = array<i32>} : memref<8x128xf32, #tpu.memory_space<vmem>>, vector<8x128xf32>,
      %15 = arith.truncf %11 : vector<8x128xf32> to vector<8x128xbf16>
      %c0_12 = arith.constant 0 : index
      %c0_13 = arith.constant 0 : index
      %16 = vector.load %arg7[%c0_12, %c0_13] : memref<128x256xbf16, #tpu.memory_space<vmem>>, vector<128x256xbf16>
      %cst = arith.constant dense<0.000000e+00> : vector<8x256xf32>
      %17 = tpu.matmul %15, %16, %cst {dimension_numbers = #tpu.dot_dimension_numbers<[1], [0], [0], [1], [0, 0, 1, 1], [], []>} : vector<8x128xbf16>, vector<128x256xbf16>, vector<8x256xf32> -> vector<8x256xf32>
      %c0_14 = arith.constant 0 : index
      %c0_15 = arith.constant 0 : index
      %18 = vector.load %arg8[%c0_14, %c0_15] : memref<1x256xf32, #tpu.memory_space<vmem>>, vector<1x256xf32>
      %19 = vector.broadcast %18 : vector<1x256xf32> to vector<8x256xf32>
      %20 = arith.addf %17, %19 : vector<8x256xf32>
      %c0_16 = arith.constant 0 : index
      %c0_17 = arith.constant 0 : index
      %21 = vector.load %arg9[%c0_16, %c0_17] : memref<8x256xf32, #tpu.memory_space<vmem>>, vector<8x256xf32>
      tpu.vector_store %arg9[%c0_16, %c0_17], %20 {strides = array<i32>} : memref<8x256xf32, #tpu.memory_space<vmem>>, vector<8x256xf32>,
    } else {
    }
    return
  }
  func.func @transform_0(%arg0: i32, %arg1: memref<1xi32, #tpu.memory_space<smem>>) -> (i32, i32) {
    %c0_i32 = arith.constant 0 : i32
    %c0_i32_0 = arith.constant 0 : i32
    return %arg0, %c0_i32 : i32, i32
  }
  func.func @transform_1(%arg0: i32, %arg1: memref<1xi32, #tpu.memory_space<smem>>) -> (i32, i32) {
    %c0_i32 = arith.constant 0 : i32
    %c0_i32_0 = arith.constant 0 : i32
    %c0_i32_1 = arith.constant 0 : i32
    return %c0_i32, %c0_i32_0 : i32, i32
  }
  func.func @transform_2(%arg0: i32, %arg1: memref<1xi32, #tpu.memory_space<smem>>) -> (i32, i32) {
    %c0_i32 = arith.constant 0 : i32
    %c0_i32_0 = arith.constant 0 : i32
    %c0_i32_1 = arith.constant 0 : i32
    return %c0_i32, %c0_i32_0 : i32, i32
  }
  func.func @transform_3(%arg0: i32, %arg1: memref<1xi32, #tpu.memory_space<smem>>) -> (i32, i32) {
    %c0_i32 = arith.constant 0 : i32
    %c0_i32_0 = arith.constant 0 : i32
    %c0_i32_1 = arith.constant 0 : i32
    return %c0_i32, %c0_i32_0 : i32, i32
  }
  func.func @transform_4(%arg0: i32, %arg1: memref<1xi32, #tpu.memory_space<smem>>) -> (i32, i32) {
    %c0_i32 = arith.constant 0 : i32
    %c0_i32_0 = arith.constant 0 : i32
    %c0_i32_1 = arith.constant 0 : i32
    return %c0_i32, %c0_i32_0 : i32, i32
  }
  func.func @transform_5(%arg0: i32, %arg1: memref<1xi32, #tpu.memory_space<smem>>) -> (i32, i32) {
    %c0_i32 = arith.constant 0 : i32
    %c0_i32_0 = arith.constant 0 : i32
    %c0_i32_1 = arith.constant 0 : i32
    return %c0_i32, %c0_i32_0 : i32, i32
  }
  func.func @transform_6(%arg0: i32, %arg1: memref<1xi32, #tpu.memory_space<smem>>) -> (i32, i32) {
    %c0_i32 = arith.constant 0 : i32
    %c0_i32_0 = arith.constant 0 : i32
    %c0_i32_1 = arith.constant 0 : i32
    return %c0_i32, %c0_i32_0 : i32, i32
  }
  func.func @transform_7(%arg0: i32, %arg1: memref<1xi32, #tpu.memory_space<smem>>) -> (i32, i32) {
    %c0_i32 = arith.constant 0 : i32
    %c0_i32_0 = arith.constant 0 : i32
    %c0_i32_1 = arith.constant 0 : i32
    return %c0_i32, %c0_i32_0 : i32, i32
  }
  func.func @transform_8(%arg0: i32, %arg1: memref<1xi32, #tpu.memory_space<smem>>) -> (i32, i32) {
    %c0_i32 = arith.constant 0 : i32
    %c0_i32_0 = arith.constant 0 : i32
    %c0_i32_1 = arith.constant 0 : i32
    return %c0_i32, %c0_i32_0 : i32, i32
  }
  func.func @transform_9(%arg0: i32, %arg1: memref<1xi32, #tpu.memory_space<smem>>) -> (i32, i32) {
    %c0_i32 = arith.constant 0 : i32
    %c0_i32_0 = arith.constant 0 : i32
    %c0_i32_1 = arith.constant 0 : i32
    return %c0_i32, %c0_i32_0 : i32, i32
  }
}

</mosaic_0001>

<bundles_post_ra>
// kernel: doc_projector_forward.1
= control target key start
LH: loop header
LB: loop body
LE: loop exit
PB: predicated region body
PF: predicated region fallthrough
CT: control target
= control target key end

     0   :  { %v2267_v0 = vmov 0.0   ;;  %s3274_s0 = inlined_call_operand.<no memory space> [shape: s32[1], index: 0, kind: input, shape index: {}]   ;;  %s3275_s1 = inlined_call_operand.vmem [shape: bf16[64,64], index: 1, kind: input, shape index: {}]   ;;  %s3276_s2 = inlined_call_operand.vmem [shape: s32[8,1], index: 2, kind: input, shape index: {}]   ;;  %s3277_s3 = inlined_call_operand.vmem [shape: bf16[64,512], index: 3, kind: input, shape index: {}]   ;;  %s3278_s4 = inlined_call_operand.vmem [shape: bf16[128,512], index: 4, kind: input, shape index: {}]   ;;  %s3279_s5 = inlined_call_operand.vmem [shape: f32[1,512], index: 5, kind: input, shape index: {}]   ;;  %s3280_s6 = inlined_call_operand.vmem [shape: bf16[128,256], index: 6, kind: input, shape index: {}]   ;;  %s3281_s7 = inlined_call_operand.vmem [shape: f32[1,256], index: 7, kind: input, shape index: {}]   ;;  %s3282_s8 = inlined_call_operand.vmem [shape: f32[8,256], index: 8, kind: output, shape index: {0}]   ;;  %s3283_s9 = inlined_call_operand.vmem [shape: f32[8,128], index: 9, kind: output, shape index: {1}]   ;;  %s3284_s10 = inlined_call_operand.vmem [shape: f32[8,128], index: 10, kind: output, shape index: {2}]  }
   0x1   :  { %37 = vst [vmem:[#allocation2] sm:$0xff] %v2267_v0  ;;  %p1755_p0 = scmp.le.s32.totalorder %s3274_s0, 0 }
   0x2   :  { %38 = vst [vmem:[#allocation3] sm:$0xff] %v2267_v0 }
   0x3   :  { %43 = sbr.rel (%p1755_p0) target bundleno = 1473 (0x5c1), region = 37 }
   0x8   :  { %v1822_v1 = vld [vmem:[%s3277_s3 + $0x60] sm:$0xf]  ;;  %v2086_v2 = vld [vmem:[%s3277_s3 + $0x6c] sm:$0xf0]  ;;  %v2084_v3 = vld [vmem:[%s3277_s3 + $0x64] sm:$0xf] }
   0x9   :  { %v1823_v4 = vor.u32 %v2086_v2, %v1822_v1  ;;  %v1824_v5 = vld [vmem:[%s3277_s3 + $0x70] sm:$0xf0]  ;;  %v1830_v6 = vld [vmem:[%s3277_s3 + $0x68] sm:$0xf]  ;;  %v2087_v7 = vld [vmem:[%s3277_s3 + $0x74] sm:$0xf0] }
   0xa   :  { %v1827_v8 = vor.u32 %v2084_v3, %v1824_v5  ;;  %v1831_v9 = vor.u32 %v2087_v7, %v1830_v6  ;;  %v2085_v10 = vld [vmem:[%s3277_s3 + $0x6c] sm:$0xf]  ;;  %v1832_v11 = vld [vmem:[%s3277_s3 + $0x78] sm:$0xf0]  ;;  %v1806_v12 = vld [vmem:[%s3277_s3 + $0x40] sm:$0xf] }
   0xb   :  { %195 = vmatpush.bf16.msra.mxu0 %v1823_v4  ;;  %v1835_v13 = vor.u32 %v2085_v10, %v1832_v11  ;;  %v2082_v14 = vld [vmem:[%s3277_s3 + $0x4c] sm:$0xf0]  ;;  %v2080_v15 = vld [vmem:[%s3277_s3 + $0x44] sm:$0xf]  ;;  %v1808_v16 = vld [vmem:[%s3277_s3 + $0x50] sm:$0xf0] }
   0xc   :  { %224 = vmatpush.bf16.msra.mxu1 %v1827_v8  ;;  %253 = vmatpush.bf16.msra.mxu2 %v1831_v9  ;;  %v1807_v17 = vor.u32 %v2082_v14, %v1806_v12  ;;  %v1811_v18 = vor.u32 %v2080_v15, %v1808_v16  ;;  %v1814_v19 = vld [vmem:[%s3277_s3 + $0x48] sm:$0xf]  ;;  %v2083_v20 = vld [vmem:[%s3277_s3 + $0x54] sm:$0xf0]  ;;  %v2081_v21 = vld [vmem:[%s3277_s3 + $0x4c] sm:$0xf] }
   0xd   :  { %282 = vmatpush.bf16.msra.mxu3 %v1835_v13  ;;  %v1815_v22 = vor.u32 %v2083_v20, %v1814_v19  ;;  %v1816_v23 = vld [vmem:[%s3277_s3 + $0x58] sm:$0xf0]  ;;  %v1790_v24 = vld [vmem:[%s3277_s3 + $0x20] sm:$0xf]  ;;  %v2078_v25 = vld [vmem:[%s3277_s3 + $0x2c] sm:$0xf0] }
   0xe   :  { %v1819_v26 = vor.u32 %v2081_v21, %v1816_v23  ;;  %v2076_v27 = vld [vmem:[%s3277_s3 + $0x24] sm:$0xf]  ;;  %v1792_v28 = vld [vmem:[%s3277_s3 + $0x30] sm:$0xf0]  ;;  %v1798_v29 = vld [vmem:[%s3277_s3 + $0x28] sm:$0xf]  ;;  %v1791_v30 = vor.u32 %v2078_v25, %v1790_v24 }
   0xf   :  { %196 = vmatpush.bf16.msra.mxu0 %v1807_v17  ;;  %v2079_v31 = vld [vmem:[%s3277_s3 + $0x34] sm:$0xf0]  ;;  %v2077_v32 = vld [vmem:[%s3277_s3 + $0x2c] sm:$0xf]  ;;  %v1800_v33 = vld [vmem:[%s3277_s3 + $0x38] sm:$0xf0]  ;;  %v1795_v34 = vor.u32 %v2076_v27, %v1792_v28 }
  0x10   :  { %225 = vmatpush.bf16.msra.mxu1 %v1811_v18  ;;  %254 = vmatpush.bf16.msra.mxu2 %v1815_v22  ;;  %v1799_v35 = vor.u32 %v2079_v31, %v1798_v29  ;;  %v1774_v36 = vld [vmem:[%s3277_s3] sm:$0xf]  ;;  %v2074_v37 = vld [vmem:[%s3277_s3 + $0xc] sm:$0xf0]  ;;  %v2072_v38 = vld [vmem:[%s3277_s3 + $0x4] sm:$0xf]  ;;  %v1803_v39 = vor.u32 %v2077_v32, %v1800_v33 }
  0x11   :  { %283 = vmatpush.bf16.msra.mxu3 %v1819_v26  ;;  %v1776_v40 = vld [vmem:[%s3277_s3 + $0x10] sm:$0xf0]  ;;  %v1782_v41 = vld [vmem:[%s3277_s3 + $0x8] sm:$0xf]  ;;  %v2075_v42 = vld [vmem:[%s3277_s3 + $0x14] sm:$0xf0]  ;;  %v1775_v45 = vor.u32 %v2074_v37, %v1774_v36 }
  0x12   :  { %v2073_v43 = vld [vmem:[%s3277_s3 + $0xc] sm:$0xf]  ;;  %v1784_v44 = vld [vmem:[%s3277_s3 + $0x18] sm:$0xf0]  ;;  %v1966_v46 = vld [vmem:[%s3278_s4 + $0xe0] sm:$0xf]  ;;  %v1779_v49 = vor.u32 %v2072_v38, %v1776_v40  ;;  %v1783_v50 = vor.u32 %v2075_v42, %v1782_v41 }
  0x13   :  { %197 = vmatpush.bf16.msra.mxu0 %v1791_v30  ;;  %v2118_v47 = vld [vmem:[%s3278_s4 + $0xec] sm:$0xf0]  ;;  %v2116_v48 = vld [vmem:[%s3278_s4 + $0xe4] sm:$0xf]  ;;  %v1968_v51 = vld [vmem:[%s3278_s4 + $0xf0] sm:$0xf0]  ;;  %v1787_v52 = vor.u32 %v2073_v43, %v1784_v44 }
  0x14   :  { %226 = vmatpush.bf16.msra.mxu1 %v1795_v34  ;;  %255 = vmatpush.bf16.msra.mxu2 %v1799_v35  ;;  %v2068_v53 = vld [vmem:[%s3275_s1] sm:$0xff]  ;;  %vm178_vm0 = vcmask 523264   ;;  %v2438_v54 = vor.u32 %v2118_v47, %v1966_v46  ;;  %v1974_v55 = vld [vmem:[%s3278_s4 + $0xe8] sm:$0xf]  ;;  %v2119_v56 = vld [vmem:[%s3278_s4 + $0xf4] sm:$0xf0]  ;;  %v2446_v57 = vor.u32 %v2116_v48, %v1968_v51 }
  0x15   :  { %284 = vmatpush.bf16.msra.mxu3 %v1803_v39  ;;  %v1950_v58 = vld [vmem:[%s3278_s4 + $0xc0] sm:$0xf]  ;;  %v2114_v59 = vld [vmem:[%s3278_s4 + $0xcc] sm:$0xf0]  ;;  %v2112_v60 = vld [vmem:[%s3278_s4 + $0xc4] sm:$0xf]  ;;  %v2466_v0 = vor.u32 %v2119_v56, %v1974_v55 }
  0x16   :  { %v1952_v61 = vld [vmem:[%s3278_s4 + $0xd0] sm:$0xf0]  ;;  %v2117_v62 = vld [vmem:[%s3278_s4 + $0xec] sm:$0xf]  ;;  %v1976_v63 = vld [vmem:[%s3278_s4 + $0xf8] sm:$0xf0]  ;;  %v2469_v1 = vor.u32 %v2114_v59, %v1950_v58 }
  0x17   :  { %198 = vmatpush.bf16.msra.mxu0 %v1775_v45  ;;  %v1958_v2 = vld [vmem:[%s3278_s4 + $0xc8] sm:$0xf]  ;;  %v2115_v3 = vld [vmem:[%s3278_s4 + $0xd4] sm:$0xf0]  ;;  %v2477_v4 = vor.u32 %v2117_v62, %v1976_v63  ;;  %v1934_v5 = vld [vmem:[%s3278_s4 + $0xa0] sm:$0xf]  ;;  %v2484_v6 = vor.u32 %v2112_v60, %v1952_v61 }
  0x18   :  { %227 = vmatpush.bf16.msra.mxu1 %v1779_v49  ;;  %256 = vmatpush.bf16.msra.mxu2 %v1783_v50  ;;  %v2110_v7 = vld [vmem:[%s3278_s4 + $0xac] sm:$0xf0]  ;;  %v2113_v8 = vld [vmem:[%s3278_s4 + $0xcc] sm:$0xf]  ;;  %v1960_v9 = vld [vmem:[%s3278_s4 + $0xd8] sm:$0xf0]  ;;  %v2505_v12 = vor.u32 %v2115_v3, %v1958_v2 }
  0x19   :  { %285 = vmatpush.bf16.msra.mxu3 %v1787_v52  ;;  %v2108_v10 = vld [vmem:[%s3278_s4 + $0xa4] sm:$0xf]  ;;  %v1936_v11 = vld [vmem:[%s3278_s4 + $0xb0] sm:$0xf0]  ;;  %v2509_v13 = vor.u32 %v2110_v7, %v1934_v5  ;;  %v1942_v14 = vld [vmem:[%s3278_s4 + $0xa8] sm:$0xf]  ;;  %v2517_v16 = vor.u32 %v2113_v8, %v1960_v9 }
  0x1a   :  { %1836 = vmatmul.msk.bf16.vlgmr.msra.gmra.mxu0 %vm178_vm0, %v2068_v53  ;;  %v2111_v15 = vld [vmem:[%s3278_s4 + $0xb4] sm:$0xf0]  ;;  %v1918_v17 = vld [vmem:[%s3278_s4 + $0x80] sm:$0xf]  ;;  %v2523_v18 = vor.u32 %v2108_v10, %v1936_v11  ;;  %v2106_v19 = vld [vmem:[%s3278_s4 + $0x8c] sm:$0xf0] }
  0x1b   :  { %549 = vmatpush.bf16.msrb.mxu0 %v2438_v54  ;;  %1840 = vmatmul.msk.bf16.vlgmr.msra.gmra.mxu1 %vm178_vm0, %v2068_v53  ;;  %v2109_v20 = vld [vmem:[%s3278_s4 + $0xac] sm:$0xf]  ;;  %v1944_v21 = vld [vmem:[%s3278_s4 + $0xb8] sm:$0xf0]  ;;  %v2104_v22 = vld [vmem:[%s3278_s4 + $0x84] sm:$0xf]  ;;  %v2541_v24 = vor.u32 %v2111_v15, %v1942_v14  ;;  %v2545_v25 = vor.u32 %v2106_v19, %v1918_v17 }
  0x1c   :  { %562 = vmatpush.bf16.msrb.mxu1 %v2446_v57  ;;  %1844 = vmatmul.msk.bf16.vlgmr.msra.gmra.mxu2 %vm178_vm0, %v2068_v53  ;;  %v1920_v23 = vld [vmem:[%s3278_s4 + $0x90] sm:$0xf0]  ;;  %v1926_v26 = vld [vmem:[%s3278_s4 + $0x88] sm:$0xf]  ;;  %v2107_v27 = vld [vmem:[%s3278_s4 + $0x94] sm:$0xf0]  ;;  %v2553_v28 = vor.u32 %v2109_v20, %v1944_v21 }
  0x1d   :  { %1848 = vmatmul.msk.bf16.vlgmr.msra.gmra.mxu3 %vm178_vm0, %v2068_v53  ;;  %575 = vmatpush.bf16.msrb.mxu2 %v2466_v0  ;;  %v1902_v29 = vld [vmem:[%s3278_s4 + $0x60] sm:$0xf]  ;;  %v2559_v30 = vor.u32 %v2104_v22, %v1920_v23  ;;  %v2102_v31 = vld [vmem:[%s3278_s4 + $0x6c] sm:$0xf0]  ;;  %v2105_v32 = vld [vmem:[%s3278_s4 + $0x8c] sm:$0xf]  ;;  %v2580_v37 = vor.u32 %v2107_v27, %v1926_v26 }
  0x1e   :  { %588 = vmatpush.bf16.msrb.mxu3 %v2477_v4  ;;  %v1928_v33 = vld [vmem:[%s3278_s4 + $0x98] sm:$0xf0]  ;;  %v2100_v34 = vld [vmem:[%s3278_s4 + $0x64] sm:$0xf]  ;;  %v1904_v35 = vld [vmem:[%s3278_s4 + $0x70] sm:$0xf0]  ;;  %v2584_v38 = vor.u32 %v2102_v31, %v1902_v29 }
  0x1f   :  { %550 = vmatpush.bf16.msrb.mxu0 %v2469_v1  ;;  %v2069_v36 = vld [vmem:[%s3275_s1 + $0x8] sm:$0xff]  ;;  %v2103_v40 = vld [vmem:[%s3278_s4 + $0x74] sm:$0xf0]  ;;  %v2592_v41 = vor.u32 %v2105_v32, %v1928_v33  ;;  %v1886_v42 = vld [vmem:[%s3278_s4 + $0x40] sm:$0xf]  ;;  %v2598_v43 = vor.u32 %v2100_v34, %v1904_v35  ;;  %v2268_v35 = vmov 0  }
  0x20   :  { %563 = vmatpush.bf16.msrb.mxu1 %v2484_v6  ;;  %v1910_v39 = vld [vmem:[%s3278_s4 + $0x68] sm:$0xf]  ;;  %v2098_v44 = vld [vmem:[%s3278_s4 + $0x4c] sm:$0xf0]  ;;  %v2101_v45 = vld [vmem:[%s3278_s4 + $0x6c] sm:$0xf]  ;;  %2138 = vset.pattern.permute.xlu0 %v2268_v35 }
  0x21   :  { %576 = vmatpush.bf16.msrb.mxu2 %v2505_v12  ;;  %v1912_v46 = vld [vmem:[%s3278_s4 + $0x78] sm:$0xf0]  ;;  %v2096_v47 = vld [vmem:[%s3278_s4 + $0x44] sm:$0xf]  ;;  %v1888_v48 = vld [vmem:[%s3278_s4 + $0x50] sm:$0xf0]  ;;  %v2616_v49 = vor.u32 %v2103_v40, %v1910_v39  ;;  %v2620_v50 = vor.u32 %v2098_v44, %v1886_v42 }
  0x22   :  { %589 = vmatpush.bf16.msrb.mxu3 %v2517_v16  ;;  %v1894_v51 = vld [vmem:[%s3278_s4 + $0x48] sm:$0xf]  ;;  %v2099_v52 = vld [vmem:[%s3278_s4 + $0x54] sm:$0xf0]  ;;  %v2628_v53 = vor.u32 %v2101_v45, %v1912_v46  ;;  %v2632_v55 = vor.u32 %v2096_v47, %v1888_v48  ;;  %v1870_v58 = vld [vmem:[%s3278_s4 + $0x20] sm:$0xf] }
  0x23   :  { %551 = vmatpush.bf16.msrb.mxu0 %v2509_v13  ;;  %v2638_v56 = vor.u32 %v2099_v52, %v1894_v51  ;;  %v2094_v59 = vld [vmem:[%s3278_s4 + $0x2c] sm:$0xf0]  ;;  %v2092_v60 = vld [vmem:[%s3278_s4 + $0x24] sm:$0xf]  ;;  %v1872_v62 = vld [vmem:[%s3278_s4 + $0x30] sm:$0xf0] }
  0x24   :  { %564 = vmatpush.bf16.msrb.mxu1 %v2523_v18  ;;  %v2651_v61 = vor.u32 %v2094_v59, %v1870_v58  ;;  %v1878_v63 = vld [vmem:[%s3278_s4 + $0x28] sm:$0xf]  ;;  %v2095_v2 = vld [vmem:[%s3278_s4 + $0x34] sm:$0xf0]  ;;  %v2663_v3 = vor.u32 %v2092_v60, %v1872_v62  ;;  %v2097_v5 = vld [vmem:[%s3278_s4 + $0x4c] sm:$0xf] }
  0x25   :  { %577 = vmatpush.bf16.msrb.mxu2 %v2541_v24  ;;  %v1896_v7 = vld [vmem:[%s3278_s4 + $0x58] sm:$0xf0]  ;;  %v1854_v8 = vld [vmem:[%s3278_s4] sm:$0xf]  ;;  %v2090_v10 = vld [vmem:[%s3278_s4 + $0xc] sm:$0xf0]  ;;  %v2686_v15 = vor.u32 %v2095_v2, %v1878_v63 }
  0x26   :  { %590 = vmatpush.bf16.msrb.mxu3 %v2553_v28  ;;  %v2674_v9 = vor.u32 %v2097_v5, %v1896_v7  ;;  %v2088_v11 = vld [vmem:[%s3278_s4 + $0x4] sm:$0xf]  ;;  %v1856_v14 = vld [vmem:[%s3278_s4 + $0x10] sm:$0xf0]  ;;  %v2093_v17 = vld [vmem:[%s3278_s4 + $0x2c] sm:$0xf]  ;;  %v2696_v20 = vor.u32 %v2090_v10, %v1854_v8 }
  0x27   :  { %552 = vmatpush.bf16.msrb.mxu0 %v2545_v25  ;;  %v1880_v19 = vld [vmem:[%s3278_s4 + $0x38] sm:$0xf0]  ;;  %v1862_v22 = vld [vmem:[%s3278_s4 + $0x8] sm:$0xf]  ;;  %v2091_v23 = vld [vmem:[%s3278_s4 + $0x14] sm:$0xf0]  ;;  %v2707_v26 = vor.u32 %v2088_v11, %v1856_v14 }
  0x28   :  { %565 = vmatpush.bf16.msrb.mxu1 %v2559_v30  ;;  %v2698_v21 = vor.u32 %v2093_v17, %v1880_v19  ;;  %v2089_v27 = vld [vmem:[%s3278_s4 + $0xc] sm:$0xf]  ;;  %v1864_v29 = vld [vmem:[%s3278_s4 + $0x18] sm:$0xf0]  ;;  %v2716_v31 = vor.u32 %v2091_v23, %v1862_v22  ;;  %v2070_v33 = vld [vmem:[%s3275_s1 + $0x10] sm:$0xff] }
  0x29   :  { %578 = vmatpush.bf16.msrb.mxu2 %v2580_v37  ;;  %v2720_v32 = vor.u32 %v2089_v27, %v1864_v29  ;;  %v371_v34 = vld [vmem:[%s3276_s2] sm:$0xff] }
  0x2a   :  { %591 = vmatpush.bf16.msrb.mxu3 %v2592_v41  ;;  %1837 = vmatmul.msk.bf16.gmra.mxu0 %vm178_vm0, %v2069_v36  ;;  %v2769_v39 = vld [vmem:[#allocation2] sm:$0xff] }
  0x2b   :  { %553 = vmatpush.bf16.msrb.mxu0 %v2584_v38  ;;  %1841 = vmatmul.msk.bf16.gmra.mxu1 %vm178_vm0, %v2069_v36  ;;  %v388_v40 = vpack.c.bf16 %v2769_v39, %v2769_v39  ;;  %v68_v45 = vld [vmem:[%s3279_s5] sm:$0xf] }
  0x2c   :  { %566 = vmatpush.bf16.msrb.mxu1 %v2598_v43  ;;  %1845 = vmatmul.msk.bf16.gmra.mxu2 %vm178_vm0, %v2069_v36  ;;  %v2817_v46 = vperm.slane %v68_v45, 0  ;;  %v2821_v48 = vperm.slane %v68_v45, 1  ;;  %v2829_v63 = vperm.slane %v68_v45, 2  ;;  %v2831_v2 = vperm.slane %v68_v45, 3 }
  0x2d   :  { %1849 = vmatmul.msk.bf16.gmra.mxu3 %vm178_vm0, %v2069_v36  ;;  %579 = vmatpush.bf16.msrb.mxu2 %v2616_v49  ;;  %v2071_v36 = vld [vmem:[%s3275_s1 + $0x18] sm:$0xff] }
  0x2e   :  { %592 = vmatpush.bf16.msrb.mxu3 %v2628_v53  ;;  %375 = vperm.xlu0 %2138, %v371_v34  }
  0x2f   :  { %554 = vmatpush.bf16.msrb.mxu0 %v2620_v50 }
  0x30   :  { %567 = vmatpush.bf16.msrb.mxu1 %v2632_v55 }
  0x31   :  { %580 = vmatpush.bf16.msrb.mxu2 %v2638_v56 }
  0x32   :  { %593 = vmatpush.bf16.msrb.mxu3 %v2674_v9 }
  0x33   :  { %555 = vmatpush.bf16.msrb.mxu0 %v2651_v61 }
  0x34   :  { %568 = vmatpush.bf16.msrb.mxu1 %v2663_v3 }
  0x35   :  { %581 = vmatpush.bf16.msrb.mxu2 %v2686_v15 }
  0x36   :  { %594 = vmatpush.bf16.msrb.mxu3 %v2698_v21 }
  0x37   :  { %556 = vmatpush.bf16.msrb.mxu0 %v2696_v20 }
  0x38   :  { %569 = vmatpush.bf16.msrb.mxu1 %v2707_v26 }
  0x39   :  { %582 = vmatpush.bf16.msrb.mxu2 %v2716_v31 }
  0x3a   :  { %595 = vmatpush.bf16.msrb.mxu3 %v2720_v32  ;;  %1838 = vmatmul.msk.bf16.gmra.mxu0 %vm178_vm0, %v2070_v33 }
  0x3b   :  { %681 = vmatpush.bf16.msra.mxu0 %v2438_v54  ;;  %1842 = vmatmul.msk.bf16.gmra.mxu1 %vm178_vm0, %v2070_v33 }
  0x3c   :  { %694 = vmatpush.bf16.msra.mxu1 %v2446_v57  ;;  %1846 = vmatmul.msk.bf16.gmra.mxu2 %vm178_vm0, %v2070_v33 }
  0x3d   :  { %707 = vmatpush.bf16.msra.mxu2 %v2466_v0  ;;  %1850 = vmatmul.msk.bf16.gmra.mxu3 %vm178_vm0, %v2070_v33 }
  0x3e   :  { %720 = vmatpush.bf16.msra.mxu3 %v2477_v4 }
  0x3f   :  { %682 = vmatpush.bf16.msra.mxu0 %v2469_v1 }
  0x40   :  { %695 = vmatpush.bf16.msra.mxu1 %v2484_v6 }
  0x41   :  { %708 = vmatpush.bf16.msra.mxu2 %v2505_v12 }
  0x42   :  { %721 = vmatpush.bf16.msra.mxu3 %v2517_v16 }
  0x43   :  { %683 = vmatpush.bf16.msra.mxu0 %v2509_v13 }
  0x44   :  { %696 = vmatpush.bf16.msra.mxu1 %v2523_v18 }
  0x45   :  { %709 = vmatpush.bf16.msra.mxu2 %v2541_v24 }
  0x46   :  { %722 = vmatpush.bf16.msra.mxu3 %v2553_v28 }
  0x47   :  { %684 = vmatpush.bf16.msra.mxu0 %v2545_v25 }
  0x48   :  { %697 = vmatpush.bf16.msra.mxu1 %v2559_v30 }
  0x49   :  { %710 = vmatpush.bf16.msra.mxu2 %v2580_v37 }
  0x4a   :  { %723 = vmatpush.bf16.msra.mxu3 %v2592_v41  ;;  %1839 = vmatmul.msk.bf16.gmra.mxu0 %vm178_vm0, %v2071_v36 }
  0x4b   :  { %685 = vmatpush.bf16.msra.mxu0 %v2584_v38  ;;  %1843 = vmatmul.msk.bf16.gmra.mxu1 %vm178_vm0, %v2071_v36 }
  0x4c   :  { %698 = vmatpush.bf16.msra.mxu1 %v2598_v43  ;;  %1847 = vmatmul.msk.bf16.gmra.mxu2 %vm178_vm0, %v2071_v36 }
  0x4d   :  { %711 = vmatpush.bf16.msra.mxu2 %v2616_v49  ;;  %1851 = vmatmul.msk.bf16.gmra.mxu3 %vm178_vm0, %v2071_v36 }
  0x4e   :  { %724 = vmatpush.bf16.msra.mxu3 %v2628_v53 }
  0x4f   :  { %686 = vmatpush.bf16.msra.mxu0 %v2620_v50 }
  0x50   :  { %699 = vmatpush.bf16.msra.mxu1 %v2632_v55 }
  0x51   :  { %712 = vmatpush.bf16.msra.mxu2 %v2638_v56 }
  0x52   :  { %725 = vmatpush.bf16.msra.mxu3 %v2674_v9 }
  0x53   :  { %687 = vmatpush.bf16.msra.mxu0 %v2651_v61 }
  0x54   :  { %700 = vmatpush.bf16.msra.mxu1 %v2663_v3 }
  0x55   :  { %713 = vmatpush.bf16.msra.mxu2 %v2686_v15 }
  0x56   :  { %726 = vmatpush.bf16.msra.mxu3 %v2698_v21 }
  0x57   :  { %688 = vmatpush.bf16.msra.mxu0 %v2696_v20 }
  0x58   :  { %701 = vmatpush.bf16.msra.mxu1 %v2707_v26 }
  0x59   :  { %714 = vmatpush.bf16.msra.mxu2 %v2716_v31 }
  0x5a   :  { %727 = vmatpush.bf16.msra.mxu3 %v2720_v32  ;;  %557 = vmatmul.bf16.vlgmr.msrb.gmra.mxu0 %v388_v40 }
  0x5b   :  { %570 = vmatmul.bf16.vlgmr.msrb.gmra.mxu1 %v388_v40  ;;  %813 = vmatpush.bf16.msrb.mxu0 %v2438_v54 }
  0x5c   :  { %583 = vmatmul.bf16.vlgmr.msrb.gmra.mxu2 %v388_v40  ;;  %826 = vmatpush.bf16.msrb.mxu1 %v2446_v57 }
  0x5d   :  { %596 = vmatmul.bf16.vlgmr.msrb.gmra.mxu3 %v388_v40  ;;  %839 = vmatpush.bf16.msrb.mxu2 %v2466_v0 }
  0x5e   :  { %852 = vmatpush.bf16.msrb.mxu3 %v2477_v4 }
  0x5f   :  { %814 = vmatpush.bf16.msrb.mxu0 %v2469_v1 }
  0x60   :  { %827 = vmatpush.bf16.msrb.mxu1 %v2484_v6 }
  0x61   :  { %840 = vmatpush.bf16.msrb.mxu2 %v2505_v12 }
  0x62   :  { %853 = vmatpush.bf16.msrb.mxu3 %v2517_v16 }
  0x63   :  { %815 = vmatpush.bf16.msrb.mxu0 %v2509_v13 }
  0x64   :  { %828 = vmatpush.bf16.msrb.mxu1 %v2523_v18 }
  0x65   :  { %841 = vmatpush.bf16.msrb.mxu2 %v2541_v24 }
  0x66   :  { %854 = vmatpush.bf16.msrb.mxu3 %v2553_v28 }
  0x67   :  { %816 = vmatpush.bf16.msrb.mxu0 %v2545_v25 }
  0x68   :  { %829 = vmatpush.bf16.msrb.mxu1 %v2559_v30 }
  0x69   :  { %842 = vmatpush.bf16.msrb.mxu2 %v2580_v37 }
  0x6a   :  { %855 = vmatpush.bf16.msrb.mxu3 %v2592_v41 }
  0x6b   :  { %817 = vmatpush.bf16.msrb.mxu0 %v2584_v38 }
  0x6c   :  { %830 = vmatpush.bf16.msrb.mxu1 %v2598_v43 }
  0x6d   :  { %843 = vmatpush.bf16.msrb.mxu2 %v2616_v49 }
  0x6e   :  { %856 = vmatpush.bf16.msrb.mxu3 %v2628_v53 }
  0x6f   :  { %818 = vmatpush.bf16.msrb.mxu0 %v2620_v50 }
  0x70   :  { %831 = vmatpush.bf16.msrb.mxu1 %v2632_v55 }
  0x71   :  { %844 = vmatpush.bf16.msrb.mxu2 %v2638_v56 }
  0x72   :  { %857 = vmatpush.bf16.msrb.mxu3 %v2674_v9 }
  0x73   :  { %819 = vmatpush.bf16.msrb.mxu0 %v2651_v61 }
  0x74   :  { %832 = vmatpush.bf16.msrb.mxu1 %v2663_v3 }
  0x75   :  { %845 = vmatpush.bf16.msrb.mxu2 %v2686_v15 }
  0x76   :  { %858 = vmatpush.bf16.msrb.mxu3 %v2698_v21 }
  0x77   :  { %820 = vmatpush.bf16.msrb.mxu0 %v2696_v20 }
  0x78   :  { %833 = vmatpush.bf16.msrb.mxu1 %v2707_v26 }
  0x79   :  { %846 = vmatpush.bf16.msrb.mxu2 %v2716_v31 }
  0x7a   :  { %859 = vmatpush.bf16.msrb.mxu3 %v2720_v32 }
  0x97   :  { %v2810_v42 = vpop.f32.mrf.mxu0 }
  0x98   :  { %v2812_v44 = vpop.f32.mrf.mxu1 }
  0x9f   :  { %v2819_v47 = vpop.f32.mrf.mxu2  ;;  %v202_v52 = vpop.f32.mrf.mxu0 }
  0xa0   :  { %v2823_v51 = vpop.f32.mrf.mxu3  ;;  %v203_v58 = vadd.f32 %v202_v52, %v2817_v46  ;;  %v231_v59 = vpop.f32.mrf.mxu1 }
  0xa1   :  { %v232_v60 = vadd.f32 %v231_v59, %v2821_v48 }
  0xa3   :  { %v2827_v62 = vpack.c.bf16 %v232_v60, %v203_v58 }
  0xa7   :  { %v260_v5 = vpop.f32.mrf.mxu2  ;;  %v205_v10 = vpop.f32.mrf.mxu0 }
  0xa8   :  { %v261_v7 = vadd.f32 %v260_v5, %v2829_v63  ;;  %v289_v8 = vpop.f32.mrf.mxu3  ;;  %v206_v14 = vadd.f32 %v205_v10, %v2817_v46  ;;  %v234_v17 = vpop.f32.mrf.mxu1 }
  0xa9   :  { %v290_v11 = vadd.f32 %v289_v8, %v2831_v2  ;;  %v235_v19 = vadd.f32 %v234_v17, %v2821_v48 }
  0xab   :  { %v2837_v22 = vpack.c.bf16 %v290_v11, %v261_v7  ;;  %v2839_v23 = vpack.c.bf16 %v235_v19, %v206_v14 }
  0xaf   :  { %v263_v27 = vpop.f32.mrf.mxu2  ;;  %v207_v34 = vpop.f32.mrf.mxu0 }
  0xb0   :  { %v264_v29 = vadd.f32 %v263_v27, %v2829_v63  ;;  %v292_v33 = vpop.f32.mrf.mxu3  ;;  %v208_v36 = vadd.f32 %v207_v34, %v2817_v46  ;;  %v236_v40 = vpop.f32.mrf.mxu1 }
  0xb1   :  { %v293_v35 = vadd.f32 %v292_v33, %v2831_v2  ;;  %v237_v45 = vadd.f32 %v236_v40, %v2821_v48 }
  0xb3   :  { %v2845_v52 = vpack.c.bf16 %v293_v35, %v264_v29  ;;  %v2847_v58 = vpack.c.bf16 %v237_v45, %v208_v36 }
  0xb7   :  { %v265_v59 = vpop.f32.mrf.mxu2  ;;  %v210_v7 = vpop.f32.mrf.mxu0 }
  0xb8   :  { %v266_v60 = vadd.f32 %v265_v59, %v2829_v63  ;;  %v294_v5 = vpop.f32.mrf.mxu3  ;;  %v211_v10 = vadd.f32 %v210_v7, %v2817_v46  ;;  %v239_v11 = vpop.f32.mrf.mxu1 }
  0xb9   :  { %v295_v8 = vadd.f32 %v294_v5, %v2831_v2  ;;  %v240_v14 = vadd.f32 %v239_v11, %v2821_v48 }
  0xbb   :  { %v2853_v17 = vpack.c.bf16 %v295_v8, %v266_v60  ;;  %v2855_v19 = vpack.c.bf16 %v240_v14, %v211_v10 }
  0xbd   :  { %3293 = vst [vmem:[#allocation7_spill] sm:$0xff] %v2855_v19 }
  0xbf   :  { %v268_v27 = vpop.f32.mrf.mxu2  ;;  %v212_v34 = vpop.f32.mrf.mxu0 }
  0xc0   :  { %v269_v29 = vadd.f32 %v268_v27, %v2829_v63  ;;  %v297_v33 = vpop.f32.mrf.mxu3  ;;  %v213_v36 = vadd.f32 %v212_v34, %v2817_v46  ;;  %v241_v40 = vpop.f32.mrf.mxu1 }
  0xc1   :  { %v298_v35 = vadd.f32 %v297_v33, %v2831_v2  ;;  %v242_v45 = vadd.f32 %v241_v40, %v2821_v48 }
  0xc3   :  { %v2861_v59 = vpack.c.bf16 %v298_v35, %v269_v29  ;;  %v2863_v5 = vpack.c.bf16 %v242_v45, %v213_v36  ;;  %v201_v29 = vadd.f32 %v2810_v42, %v2817_v46  ;;  %v230_v35 = vadd.f32 %v2812_v44, %v2821_v48 }
  0xc4   :  { %v259_v42 = vadd.f32 %v2819_v47, %v2829_v63  ;;  %v288_v44 = vadd.f32 %v2823_v51, %v2831_v2 }
  0xc5   :  { %3294 = vst [vmem:[#allocation8_spill] sm:$0xff] %v2861_v59 }
  0xc6   :  { %3295 = vst [vmem:[#allocation9_spill] sm:$0xff] %v2863_v5 }
  0xc7   :  { %v270_v60 = vpop.f32.mrf.mxu2  ;;  %v215_v10 = vpop.f32.mrf.mxu0 }
  0xc8   :  { %v271_v7 = vadd.f32 %v270_v60, %v2829_v63  ;;  %v299_v8 = vpop.f32.mrf.mxu3  ;;  %v216_v14 = vadd.f32 %v215_v10, %v2817_v46  ;;  %v244_v27 = vpop.f32.mrf.mxu1 }
  0xc9   :  { %v300_v11 = vadd.f32 %v299_v8, %v2831_v2  ;;  %v245_v33 = vadd.f32 %v244_v27, %v2821_v48 }
  0xcb   :  { %v2869_v34 = vpack.c.bf16 %v300_v11, %v271_v7  ;;  %v2871_v19 = vpack.c.bf16 %v245_v33, %v216_v14  ;;  %v307_v11 = vpack.c.bf16 %v230_v35, %v201_v29 }
  0xcd   :  { %3296 = vst [vmem:[#allocation10_spill] sm:$0xff] %v2869_v34 }
  0xce   :  { %3297 = vst [vmem:[#allocation11_spill] sm:$0xff] %v2871_v19  ;;  %v384_v19 = vunpack.c.l.bf16 %v307_v11 }
  0xcf   :  { %v273_v36 = vpop.f32.mrf.mxu2  ;;  %v217_v60 = vpop.f32.mrf.mxu0 }
  0xd0   :  { %v274_v40 = vadd.f32 %v273_v36, %v2829_v63  ;;  %v302_v45 = vpop.f32.mrf.mxu3  ;;  %v218_v10 = vadd.f32 %v217_v60, %v2817_v46  ;;  %v246_v27 = vpop.f32.mrf.mxu1  ;;  %v385_v60 = vunpack.c.h.bf16 %v307_v11 }
  0xd1   :  { %v303_v8 = vadd.f32 %v302_v45, %v2831_v2  ;;  %v247_v7 = vadd.f32 %v246_v27, %v2821_v48 }
  0xd3   :  { %v2881_v14 = vpack.c.bf16 %v303_v8, %v274_v40  ;;  %v2883_v33 = vpack.c.bf16 %v247_v7, %v218_v10  ;;  %v308_v40 = vpack.c.bf16 %v288_v44, %v259_v42 }
  0xd5   :  { %3298 = vst [vmem:[#allocation12_spill] sm:$0xff] %v2881_v14  ;;  %v386_v51 = vunpack.c.l.bf16 %v308_v40 }
  0xd6   :  { %3299 = vst [vmem:[#allocation13_spill] sm:$0xff] %v2883_v33 }
  0xd7   :  { %v275_v36 = vpop.f32.mrf.mxu2  ;;  %v558_v46 = vpop.f32.mrf.mxu0 }
  0xd8   :  { %v276_v45 = vadd.f32 %v275_v36, %v2829_v63  ;;  %v304_v34 = vpop.f32.mrf.mxu3  ;;  %v601_v29 = vadd.f32 %v558_v46, %v384_v19  ;;  %v571_v35 = vpop.f32.mrf.mxu1 }
  0xd9   :  { %v305_v48 = vadd.f32 %v304_v34, %v2831_v2  ;;  %v602_v8 = vadd.f32 %v571_v35, %v385_v60 }
  0xda   :  { %v1980_v27 = vmul.f32 -1.442695, %v601_v29 }
  0xdb   :  { %v2891_v10 = vpack.c.bf16 %v305_v48, %v276_v45  ;;  %v1981_v47 = vmul.f32 -1.442695, %v602_v8  ;;  %v387_v45 = vunpack.c.h.bf16 %v308_v40 }
  0xdc   :  { %2139 = vpow2.f32 %v1980_v27 }
  0xdd   :  { %3300 = vst [vmem:[#allocation14_spill] sm:$0xff] %v2891_v10  ;;  %2141 = vpow2.f32 %v1981_v47 }
  0xdf   :  { %v584_v7 = vpop.f32.mrf.mxu2  ;;  %v560_v63 = vpop.f32.mrf.mxu0 }
  0xe0   :  { %v603_v33 = vadd.f32 %v584_v7, %v386_v51  ;;  %v597_v14 = vpop.f32.mrf.mxu3  ;;  %v573_v36 = vpop.f32.mrf.mxu1 }
  0xe1   :  { %v604_v48 = vadd.f32 %v597_v14, %v387_v45 }
  0xe2   :  { %v1982_v5 = vmul.f32 -1.442695, %v603_v33  ;;  %v2140_v11 = vpop.eup %2139 }
  0xe3   :  { %v2142_v59 = vpop.eup %2141  ;;  %v614_v2 = vadd.f32 1.0, %v2140_v11 }
  0xe4   :  { %2143 = vpow2.f32 %v1982_v5  ;;  %v615_v19 = vadd.f32 1.0, %v2142_v59 }
  0xe5   :  { %2145 = vrcp.f32 %v614_v2  ;;  %v628_v47 = vand.u32 2147483648, %v614_v2  ;;  %v626_v59 = vand.u32 2147483647, %v614_v2  ;;  %vm622_vm3 = vweird.f32 %v614_v2 }
  0xe6   :  { %2147 = vrcp.f32 %v615_v19  ;;  %v643_v51 = vand.u32 2147483648, %v615_v19  ;;  %v641_v63 = vand.u32 2147483647, %v615_v19  ;;  %vm637_vm4 = vweird.f32 %v615_v19 }
  0xe7   :  { %v586_v34 = vpop.f32.mrf.mxu2  ;;  %v629_v11 = vor.u32 1.1754944e-38, %v628_v47  ;;  %vm627_vm7 = vcmp.eq.f32.partialorder %v626_v59, 8.507059e+37 }
  0xe8   :  { %v599_v42 = vpop.f32.mrf.mxu3  ;;  %vm642_vm8 = vcmp.eq.f32.partialorder %v641_v63, 8.507059e+37 }
  0xe9   :  { %v644_v42 = vor.u32 1.1754944e-38, %v643_v51 }
  0xea   :  { %v2144_v44 = vpop.eup %2143 }
  0xeb   :  { %v616_v46 = vadd.f32 1.0, %v2144_v44  ;;  %v2146_v60 = vpop.eup %2145  ;;  %v378_v44 = vld [vmem:[#allocation3] sm:$0xff] }
  0xec   :  { %v2148_v29 = vpop.eup %2147  ;;  %v618_v35 = vmul.f32 %v2146_v60, %v614_v2  ;;  %vm623_vm1 = vweird.f32 %v2146_v60 }
  0xed   :  { %2149 = vrcp.f32 %v616_v46  ;;  %v633_v8 = vmul.f32 %v2148_v29, %v615_v19  ;;  %vm638_vm2 = vweird.f32 %v2148_v29  ;;  %vm624_vm5 = vmor %vm622_vm3, %vm623_vm1  ;;  %v658_v51 = vand.u32 2147483648, %v616_v46 }
  0xee   :  { %v619_v27 = vsub.f32 1.0, %v618_v35  ;;  %2151 = vtanh.f32 %v604_v48  ;;  %vm639_vm6 = vmor %vm637_vm4, %vm638_vm2  ;;  %vm652_vm11 = vweird.f32 %v616_v46 }
  0xef   :  { %v634_v33 = vsub.f32 1.0, %v633_v8  ;;  %v659_v63 = vor.u32 1.1754944e-38, %v658_v51 }
  0xf0   :  { %v620_v5 = vmul.f32 %v2146_v60, %v619_v27 }
  0xf1   :  { %v635_v7 = vmul.f32 %v2148_v29, %v634_v33  ;;  %v2893_v33 = vpop.permute.xlu0 %375 }
  0xf2   :  { %v621_v40 = vadd.f32 %v2146_v60, %v620_v5  ;;  %vm668_vm9 = vcmp.gt.s32.totalorder %v2893_v33, 0 }
  0xf3   :  { %v2150_v36 = vpop.eup %2149  ;;  %v636_v34 = vadd.f32 %v2148_v29, %v635_v7 }
  0xf4   :  { %v648_v14 = vmul.f32 %v2150_v36, %v616_v46  ;;  %v625_v45 = vsel %vm624_vm5, %v2146_v60, %v621_v40  ;;  %v2152_v48 = vpop.eup %2151  ;;  %vm653_vm10 = vweird.f32 %v2150_v36 }
  0xf5   :  { %v630_v8 = vsel %vm627_vm7, %v629_v11, %v625_v45  ;;  %v640_v27 = vsel %vm639_vm6, %v2148_v29, %v636_v34  ;;  %v656_v29 = vand.u32 2147483647, %v616_v46  ;;  %vm654_vm12 = vmor %vm652_vm11, %vm653_vm10  ;;  %v677_v46 = vunpack.c.h.bf16 %v2827_v62 }
  0xf6   :  { %v649_v35 = vsub.f32 1.0, %v648_v14  ;;  %v645_v10 = vsel %vm642_vm8, %v644_v42, %v640_v27  ;;  %v664_v5 = vmul.f32 %v2152_v48, %v630_v8  ;;  %v678_v8 = vunpack.c.l.bf16 %v2837_v22 }
  0xf7   :  { %v663_v19 = vmul.f32 %v645_v10, %v378_v44  ;;  %vm657_vm13 = vcmp.eq.f32.partialorder %v656_v29, 8.507059e+37  ;;  %vm800_vm7 = vcmp.gt.s32.totalorder %v2893_v33, 1 }
  0xf8   :  { %v650_v2 = vmul.f32 %v2150_v36, %v649_v35 }
  0xf9   :  { %v665_v47 = vadd.f32 %v664_v5, %v663_v19 }
  0xfa   :  { %v651_v7 = vadd.f32 %v2150_v36, %v650_v2 }
  0xfb   :  { %2153 = vtanh.f32 %v665_v47  ;;  %v2898_v60 = vsel %vm668_vm9, %v665_v47, %v378_v44 }
  0xfc   :  { %v655_v59 = vsel %vm654_vm12, %v2150_v36, %v651_v7 }
  0xfd   :  { %v660_v14 = vsel %vm657_vm13, %v659_v63, %v655_v59 }
 0x101   :  { %v2154_v40 = vpop.eup %2153 }
 0x102   :  { %v667_v10 = vmul.f32 %v2154_v40, %v660_v14 }
 0x104   :  { %v2903_v11 = vsel %vm668_vm9, %v667_v10, %v2769_v39  ;;  %v676_v39 = vunpack.c.l.bf16 %v2827_v62  ;;  %v679_v10 = vunpack.c.h.bf16 %v2837_v22 }
 0x105   :  { %v680_v34 = vpack.c.bf16 %v2903_v11, %v2903_v11 }
 0x107   :  { %689 = vmatmul.bf16.vlgmr.msra.gmra.mxu0 %v680_v34  ;;  %702 = vmatmul.bf16.vlgmr.msra.gmra.mxu1 %v680_v34 }
 0x108   :  { %715 = vmatmul.bf16.vlgmr.msra.gmra.mxu2 %v680_v34  ;;  %728 = vmatmul.bf16.vlgmr.msra.gmra.mxu3 %v680_v34 }
 0x109   :  { %945 = vmatpush.bf16.msra.mxu0 %v2438_v54  ;;  %958 = vmatpush.bf16.msra.mxu1 %v2446_v57 }
 0x10a   :  { %971 = vmatpush.bf16.msra.mxu2 %v2466_v0  ;;  %984 = vmatpush.bf16.msra.mxu3 %v2477_v4 }
 0x10d   :  { %946 = vmatpush.bf16.msra.mxu0 %v2469_v1  ;;  %959 = vmatpush.bf16.msra.mxu1 %v2484_v6 }
 0x10e   :  { %972 = vmatpush.bf16.msra.mxu2 %v2505_v12  ;;  %985 = vmatpush.bf16.msra.mxu3 %v2517_v16 }
 0x111   :  { %947 = vmatpush.bf16.msra.mxu0 %v2509_v13  ;;  %960 = vmatpush.bf16.msra.mxu1 %v2523_v18 }
 0x112   :  { %973 = vmatpush.bf16.msra.mxu2 %v2541_v24  ;;  %986 = vmatpush.bf16.msra.mxu3 %v2553_v28 }
 0x115   :  { %948 = vmatpush.bf16.msra.mxu0 %v2545_v25  ;;  %961 = vmatpush.bf16.msra.mxu1 %v2559_v30 }
 0x116   :  { %974 = vmatpush.bf16.msra.mxu2 %v2580_v37  ;;  %987 = vmatpush.bf16.msra.mxu3 %v2592_v41 }
 0x119   :  { %949 = vmatpush.bf16.msra.mxu0 %v2584_v38  ;;  %962 = vmatpush.bf16.msra.mxu1 %v2598_v43 }
 0x11a   :  { %975 = vmatpush.bf16.msra.mxu2 %v2616_v49  ;;  %988 = vmatpush.bf16.msra.mxu3 %v2628_v53 }
 0x11d   :  { %950 = vmatpush.bf16.msra.mxu0 %v2620_v50  ;;  %963 = vmatpush.bf16.msra.mxu1 %v2632_v55 }
 0x11e   :  { %976 = vmatpush.bf16.msra.mxu2 %v2638_v56  ;;  %989 = vmatpush.bf16.msra.mxu3 %v2674_v9 }
 0x121   :  { %951 = vmatpush.bf16.msra.mxu0 %v2651_v61  ;;  %964 = vmatpush.bf16.msra.mxu1 %v2663_v3 }
 0x122   :  { %977 = vmatpush.bf16.msra.mxu2 %v2686_v15  ;;  %990 = vmatpush.bf16.msra.mxu3 %v2698_v21 }
 0x125   :  { %952 = vmatpush.bf16.msra.mxu0 %v2696_v20  ;;  %965 = vmatpush.bf16.msra.mxu1 %v2707_v26 }
 0x126   :  { %978 = vmatpush.bf16.msra.mxu2 %v2716_v31  ;;  %991 = vmatpush.bf16.msra.mxu3 %v2720_v32 }
 0x184   :  { %v690_v36 = vpop.f32.mrf.mxu0  ;;  %v703_v42 = vpop.f32.mrf.mxu1 }
 0x185   :  { %v733_v44 = vadd.f32 %v690_v36, %v676_v39  ;;  %v734_v45 = vadd.f32 %v703_v42, %v677_v46 }
 0x187   :  { %v1983_v48 = vmul.f32 -1.442695, %v733_v44  ;;  %v1984_v35 = vmul.f32 -1.442695, %v734_v45 }
 0x189   :  { %2155 = vpow2.f32 %v1983_v48 }
 0x18a   :  { %2157 = vpow2.f32 %v1984_v35 }
 0x18b   :  { %v716_v27 = vpop.f32.mrf.mxu2  ;;  %v729_v5 = vpop.f32.mrf.mxu3 }
 0x18c   :  { %v735_v2 = vadd.f32 %v716_v27, %v678_v8  ;;  %v692_v19 = vpop.f32.mrf.mxu0  ;;  %v705_v47 = vpop.f32.mrf.mxu1  ;;  %v736_v46 = vadd.f32 %v729_v5, %v679_v10 }
 0x18e   :  { %v1985_v7 = vmul.f32 -1.442695, %v735_v2 }
 0x18f   :  { %v2156_v51 = vpop.eup %2155 }
 0x190   :  { %v2158_v29 = vpop.eup %2157  ;;  %v746_v59 = vadd.f32 1.0, %v2156_v51  ;;  %2159 = vpow2.f32 %v1985_v7 }
 0x191   :  { %v747_v62 = vadd.f32 1.0, %v2158_v29 }
 0x192   :  { %2161 = vrcp.f32 %v746_v59  ;;  %v760_v35 = vand.u32 2147483648, %v746_v59  ;;  %v758_v2 = vand.u32 2147483647, %v746_v59  ;;  %vm754_vm0 = vweird.f32 %v746_v59 }
 0x193   :  { %2163 = vrcp.f32 %v747_v62  ;;  %v718_v63 = vpop.f32.mrf.mxu2  ;;  %v731_v40 = vpop.f32.mrf.mxu3  ;;  %v775_v8 = vand.u32 2147483648, %v747_v62  ;;  %v773_v47 = vand.u32 2147483647, %v747_v62  ;;  %vm769_vm1 = vweird.f32 %v747_v62 }
 0x194   :  { %v761_v51 = vor.u32 1.1754944e-38, %v760_v35  ;;  %vm759_vm4 = vcmp.eq.f32.partialorder %v758_v2, 8.507059e+37 }
 0x195   :  { %v776_v63 = vor.u32 1.1754944e-38, %v775_v8  ;;  %vm774_vm5 = vcmp.eq.f32.partialorder %v773_v47, 8.507059e+37 }
 0x196   :  { %v2160_v14 = vpop.eup %2159 }
 0x197   :  { %v748_v34 = vadd.f32 1.0, %v2160_v14 }
 0x198   :  { %v2162_v39 = vpop.eup %2161 }
 0x199   :  { %v2164_v36 = vpop.eup %2163  ;;  %v750_v42 = vmul.f32 %v2162_v39, %v746_v59  ;;  %2165 = vrcp.f32 %v748_v34  ;;  %vm755_vm14 = vweird.f32 %v2162_v39  ;;  %v790_v35 = vand.u32 2147483648, %v748_v34 }
 0x19a   :  { %v765_v44 = vmul.f32 %v2164_v36, %v747_v62  ;;  %2167 = vtanh.f32 %v736_v46  ;;  %vm770_vm15 = vweird.f32 %v2164_v36  ;;  %vm756_vm2 = vmor %vm754_vm0, %vm755_vm14  ;;  %vm784_vm8 = vweird.f32 %v748_v34 }
 0x19b   :  { %v751_v45 = vsub.f32 1.0, %v750_v42  ;;  %vm771_vm3 = vmor %vm769_vm1, %vm770_vm15  ;;  %v788_v8 = vand.u32 2147483647, %v748_v34  ;;  %v791_v2 = vor.u32 1.1754944e-38, %v790_v35 }
 0x19c   :  { %v766_v48 = vsub.f32 1.0, %v765_v44 }
 0x19d   :  { %v752_v27 = vmul.f32 %v2162_v39, %v751_v45  ;;  %vm789_vm10 = vcmp.eq.f32.partialorder %v788_v8, 8.507059e+37 }
 0x19e   :  { %v767_v19 = vmul.f32 %v2164_v36, %v766_v48 }
 0x19f   :  { %v2166_v7 = vpop.eup %2165  ;;  %v753_v22 = vadd.f32 %v2162_v39, %v752_v27 }
 0x1a0   :  { %v780_v5 = vmul.f32 %v2166_v7, %v748_v34  ;;  %v768_v29 = vadd.f32 %v2164_v36, %v767_v19  ;;  %v2168_v14 = vpop.eup %2167  ;;  %vm785_vm6 = vweird.f32 %v2166_v7 }
 0x1a1   :  { %v757_v40 = vsel %vm756_vm2, %v2162_v39, %v753_v22  ;;  %vm786_vm9 = vmor %vm784_vm8, %vm785_vm6 }
 0x1a2   :  { %v781_v10 = vsub.f32 1.0, %v780_v5  ;;  %v762_v46 = vsel %vm759_vm4, %v761_v51, %v757_v40  ;;  %v772_v42 = vsel %vm771_vm3, %v2164_v36, %v768_v29  ;;  %vm932_vm4 = vcmp.gt.s32.totalorder %v2893_v33, 2 }
 0x1a3   :  { %v777_v44 = vsel %vm774_vm5, %v776_v63, %v772_v42  ;;  %v796_v45 = vmul.f32 %v2168_v14, %v762_v46 }
 0x1a4   :  { %v782_v48 = vmul.f32 %v2166_v7, %v781_v10  ;;  %v795_v27 = vmul.f32 %v777_v44, %v2898_v60  ;;  %v810_v10 = vunpack.c.l.bf16 %v2845_v52 }
 0x1a6   :  { %v797_v59 = vadd.f32 %v796_v45, %v795_v27  ;;  %v783_v62 = vadd.f32 %v2166_v7, %v782_v48 }
 0x1a8   :  { %2169 = vtanh.f32 %v797_v59  ;;  %v2946_v39 = vsel %vm800_vm7, %v797_v59, %v2898_v60  ;;  %v787_v36 = vsel %vm786_vm9, %v2166_v7, %v783_v62  ;;  %v808_v60 = vunpack.c.l.bf16 %v2839_v23 }
 0x1a9   :  { %v792_v47 = vsel %vm789_vm10, %v791_v2, %v787_v36 }
 0x1ae   :  { %v2170_v19 = vpop.eup %2169 }
 0x1af   :  { %v799_v22 = vmul.f32 %v2170_v19, %v792_v47  ;;  %v811_v19 = vunpack.c.h.bf16 %v2845_v52 }
 0x1b1   :  { %v2949_v5 = vsel %vm800_vm7, %v799_v22, %v2903_v11  ;;  %v809_v11 = vunpack.c.h.bf16 %v2839_v23 }
 0x1b2   :  { %v812_v51 = vpack.c.bf16 %v2949_v5, %v2949_v5 }
 0x1b4   :  { %821 = vmatmul.bf16.vlgmr.msrb.gmra.mxu0 %v812_v51  ;;  %834 = vmatmul.bf16.vlgmr.msrb.gmra.mxu1 %v812_v51 }
 0x1b5   :  { %847 = vmatmul.bf16.vlgmr.msrb.gmra.mxu2 %v812_v51  ;;  %860 = vmatmul.bf16.vlgmr.msrb.gmra.mxu3 %v812_v51 }
 0x1b6   :  { %1077 = vmatpush.bf16.msrb.mxu0 %v2438_v54  ;;  %1090 = vmatpush.bf16.msrb.mxu1 %v2446_v57 }
 0x1b7   :  { %1103 = vmatpush.bf16.msrb.mxu2 %v2466_v0  ;;  %1116 = vmatpush.bf16.msrb.mxu3 %v2477_v4 }
 0x1ba   :  { %1078 = vmatpush.bf16.msrb.mxu0 %v2469_v1  ;;  %1091 = vmatpush.bf16.msrb.mxu1 %v2484_v6 }
 0x1bb   :  { %1104 = vmatpush.bf16.msrb.mxu2 %v2505_v12  ;;  %1117 = vmatpush.bf16.msrb.mxu3 %v2517_v16 }
 0x1be   :  { %1079 = vmatpush.bf16.msrb.mxu0 %v2509_v13  ;;  %1092 = vmatpush.bf16.msrb.mxu1 %v2523_v18 }
 0x1bf   :  { %1105 = vmatpush.bf16.msrb.mxu2 %v2541_v24  ;;  %1118 = vmatpush.bf16.msrb.mxu3 %v2553_v28 }
 0x1c2   :  { %1080 = vmatpush.bf16.msrb.mxu0 %v2545_v25  ;;  %1093 = vmatpush.bf16.msrb.mxu1 %v2559_v30 }
 0x1c3   :  { %1106 = vmatpush.bf16.msrb.mxu2 %v2580_v37  ;;  %1119 = vmatpush.bf16.msrb.mxu3 %v2592_v41 }
 0x1c6   :  { %1081 = vmatpush.bf16.msrb.mxu0 %v2584_v38  ;;  %1094 = vmatpush.bf16.msrb.mxu1 %v2598_v43 }
 0x1c7   :  { %1107 = vmatpush.bf16.msrb.mxu2 %v2616_v49  ;;  %1120 = vmatpush.bf16.msrb.mxu3 %v2628_v53 }
 0x1ca   :  { %1082 = vmatpush.bf16.msrb.mxu0 %v2620_v50  ;;  %1095 = vmatpush.bf16.msrb.mxu1 %v2632_v55 }
 0x1cb   :  { %1108 = vmatpush.bf16.msrb.mxu2 %v2638_v56  ;;  %1121 = vmatpush.bf16.msrb.mxu3 %v2674_v9 }
 0x1ce   :  { %1083 = vmatpush.bf16.msrb.mxu0 %v2651_v61  ;;  %1096 = vmatpush.bf16.msrb.mxu1 %v2663_v3 }
 0x1cf   :  { %1109 = vmatpush.bf16.msrb.mxu2 %v2686_v15  ;;  %1122 = vmatpush.bf16.msrb.mxu3 %v2698_v21 }
 0x1d2   :  { %1084 = vmatpush.bf16.msrb.mxu0 %v2696_v20  ;;  %1097 = vmatpush.bf16.msrb.mxu1 %v2707_v26 }
 0x1d3   :  { %1110 = vmatpush.bf16.msrb.mxu2 %v2716_v31  ;;  %1123 = vmatpush.bf16.msrb.mxu3 %v2720_v32 }
 0x231   :  { %v822_v34 = vpop.f32.mrf.mxu0  ;;  %v835_v7 = vpop.f32.mrf.mxu1 }
 0x232   :  { %v865_v29 = vadd.f32 %v822_v34, %v808_v60  ;;  %v866_v63 = vadd.f32 %v835_v7, %v809_v11 }
 0x234   :  { %v1986_v40 = vmul.f32 -1.442695, %v865_v29  ;;  %v1987_v14 = vmul.f32 -1.442695, %v866_v63 }
 0x236   :  { %2171 = vpow2.f32 %v1986_v40 }
 0x237   :  { %2173 = vpow2.f32 %v1987_v14 }
 0x238   :  { %v848_v46 = vpop.f32.mrf.mxu2  ;;  %v861_v42 = vpop.f32.mrf.mxu3 }
 0x239   :  { %v867_v44 = vadd.f32 %v848_v46, %v810_v10  ;;  %v824_v45 = vpop.f32.mrf.mxu0  ;;  %v837_v48 = vpop.f32.mrf.mxu1  ;;  %v868_v51 = vadd.f32 %v861_v42, %v811_v19 }
 0x23b   :  { %v1988_v27 = vmul.f32 -1.442695, %v867_v44 }
 0x23c   :  { %v2172_v59 = vpop.eup %2171 }
 0x23d   :  { %v2174_v62 = vpop.eup %2173  ;;  %v878_v35 = vadd.f32 1.0, %v2172_v59  ;;  %2175 = vpow2.f32 %v1988_v27 }
 0x23e   :  { %v879_v23 = vadd.f32 1.0, %v2174_v62 }
 0x23f   :  { %2177 = vrcp.f32 %v878_v35  ;;  %v892_v63 = vand.u32 2147483648, %v878_v35  ;;  %v890_v10 = vand.u32 2147483647, %v878_v35  ;;  %vm886_vm13 = vweird.f32 %v878_v35 }
 0x240   :  { %2179 = vrcp.f32 %v879_v23  ;;  %v850_v8 = vpop.f32.mrf.mxu2  ;;  %v863_v36 = vpop.f32.mrf.mxu3  ;;  %v907_v40 = vand.u32 2147483648, %v879_v23  ;;  %v905_v44 = vand.u32 2147483647, %v879_v23  ;;  %vm901_vm14 = vweird.f32 %v879_v23 }
 0x241   :  { %v893_v48 = vor.u32 1.1754944e-38, %v892_v63  ;;  %vm891_vm1 = vcmp.eq.f32.partialorder %v890_v10, 8.507059e+37 }
 0x242   :  { %v908_v59 = vor.u32 1.1754944e-38, %v907_v40  ;;  %vm906_vm2 = vcmp.eq.f32.partialorder %v905_v44, 8.507059e+37 }
 0x243   :  { %v2176_v2 = vpop.eup %2175 }
 0x244   :  { %v880_v47 = vadd.f32 1.0, %v2176_v2 }
 0x245   :  { %v2178_v22 = vpop.eup %2177 }
 0x246   :  { %v2180_v60 = vpop.eup %2179  ;;  %v882_v11 = vmul.f32 %v2178_v22, %v878_v35  ;;  %2181 = vrcp.f32 %v880_v47  ;;  %vm887_vm11 = vweird.f32 %v2178_v22  ;;  %vm916_vm5 = vweird.f32 %v880_v47 }
 0x247   :  { %v897_v34 = vmul.f32 %v2180_v60, %v879_v23  ;;  %2183 = vtanh.f32 %v868_v51  ;;  %vm902_vm12 = vweird.f32 %v2180_v60  ;;  %vm888_vm15 = vmor %vm886_vm13, %vm887_vm11  ;;  %v920_v63 = vand.u32 2147483647, %v880_v47 }
 0x248   :  { %v883_v7 = vsub.f32 1.0, %v882_v11  ;;  %vm903_vm0 = vmor %vm901_vm14, %vm902_vm12 }
 0x249   :  { %v898_v29 = vsub.f32 1.0, %v897_v34  ;;  %vm921_vm7 = vcmp.eq.f32.partialorder %v920_v63, 8.507059e+37 }
 0x24a   :  { %v884_v14 = vmul.f32 %v2178_v22, %v883_v7 }
 0x24b   :  { %v899_v46 = vmul.f32 %v2180_v60, %v898_v29  ;;  %v922_v29 = vand.u32 2147483648, %v880_v47 }
 0x24c   :  { %v2182_v45 = vpop.eup %2181  ;;  %v885_v52 = vadd.f32 %v2178_v22, %v884_v14 }
 0x24d   :  { %v912_v42 = vmul.f32 %v2182_v45, %v880_v47  ;;  %v900_v27 = vadd.f32 %v2180_v60, %v899_v46  ;;  %v2184_v8 = vpop.eup %2183  ;;  %vm917_vm3 = vweird.f32 %v2182_v45  ;;  %v923_v40 = vor.u32 1.1754944e-38, %v922_v29 }
 0x24e   :  { %v889_v62 = vsel %vm888_vm15, %v2178_v22, %v885_v52  ;;  %vm918_vm6 = vmor %vm916_vm5, %vm917_vm3 }
 0x24f   :  { %v913_v36 = vsub.f32 1.0, %v912_v42  ;;  %v894_v2 = vsel %vm891_vm1, %v893_v48, %v889_v62  ;;  %v904_v19 = vsel %vm903_vm0, %v2180_v60, %v900_v27  ;;  %v942_v62 = vunpack.c.l.bf16 %v2853_v17 }
 0x250   :  { %v909_v51 = vsel %vm906_vm2, %v908_v59, %v904_v19  ;;  %v928_v11 = vmul.f32 %v2184_v8, %v894_v2  ;;  %vm1064_vm1 = vcmp.gt.s32.totalorder %v2893_v33, 3 }
 0x251   :  { %v914_v34 = vmul.f32 %v2182_v45, %v913_v36  ;;  %v927_v7 = vmul.f32 %v909_v51, %v2946_v39 }
 0x253   :  { %v929_v35 = vadd.f32 %v928_v11, %v927_v7  ;;  %v915_v23 = vadd.f32 %v2182_v45, %v914_v34 }
 0x255   :  { %2185 = vtanh.f32 %v929_v35  ;;  %v2992_v22 = vsel %vm932_vm4, %v929_v35, %v2946_v39  ;;  %v919_v60 = vsel %vm918_vm6, %v2182_v45, %v915_v23  ;;  %v940_v39 = vunpack.c.l.bf16 %v2847_v58 }
 0x256   :  { %v924_v10 = vsel %vm921_vm7, %v923_v40, %v919_v60  ;;  %v943_v60 = vunpack.c.h.bf16 %v2853_v17 }
 0x25b   :  { %v2186_v14 = vpop.eup %2185 }
 0x25c   :  { %v931_v46 = vmul.f32 %v2186_v14, %v924_v10 }
 0x25e   :  { %v2995_v44 = vsel %vm932_vm4, %v931_v46, %v2949_v5  ;;  %v941_v5 = vunpack.c.h.bf16 %v2847_v58 }
 0x25f   :  { %v944_v52 = vpack.c.bf16 %v2995_v44, %v2995_v44 }
 0x261   :  { %953 = vmatmul.bf16.vlgmr.msra.gmra.mxu0 %v944_v52  ;;  %966 = vmatmul.bf16.vlgmr.msra.gmra.mxu1 %v944_v52 }
 0x262   :  { %979 = vmatmul.bf16.vlgmr.msra.gmra.mxu2 %v944_v52  ;;  %992 = vmatmul.bf16.vlgmr.msra.gmra.mxu3 %v944_v52 }
 0x263   :  { %1209 = vmatpush.bf16.msra.mxu0 %v2438_v54  ;;  %1222 = vmatpush.bf16.msra.mxu1 %v2446_v57 }
 0x264   :  { %1235 = vmatpush.bf16.msra.mxu2 %v2466_v0  ;;  %1248 = vmatpush.bf16.msra.mxu3 %v2477_v4 }
 0x267   :  { %1210 = vmatpush.bf16.msra.mxu0 %v2469_v1  ;;  %1223 = vmatpush.bf16.msra.mxu1 %v2484_v6 }
 0x268   :  { %1236 = vmatpush.bf16.msra.mxu2 %v2505_v12  ;;  %1249 = vmatpush.bf16.msra.mxu3 %v2517_v16 }
 0x26b   :  { %1211 = vmatpush.bf16.msra.mxu0 %v2509_v13  ;;  %1224 = vmatpush.bf16.msra.mxu1 %v2523_v18 }
 0x26c   :  { %1237 = vmatpush.bf16.msra.mxu2 %v2541_v24  ;;  %1250 = vmatpush.bf16.msra.mxu3 %v2553_v28 }
 0x26f   :  { %1212 = vmatpush.bf16.msra.mxu0 %v2545_v25  ;;  %1225 = vmatpush.bf16.msra.mxu1 %v2559_v30 }
 0x270   :  { %1238 = vmatpush.bf16.msra.mxu2 %v2580_v37  ;;  %1251 = vmatpush.bf16.msra.mxu3 %v2592_v41 }
 0x273   :  { %1213 = vmatpush.bf16.msra.mxu0 %v2584_v38  ;;  %1226 = vmatpush.bf16.msra.mxu1 %v2598_v43 }
 0x274   :  { %1239 = vmatpush.bf16.msra.mxu2 %v2616_v49  ;;  %1252 = vmatpush.bf16.msra.mxu3 %v2628_v53 }
 0x277   :  { %1214 = vmatpush.bf16.msra.mxu0 %v2620_v50  ;;  %1227 = vmatpush.bf16.msra.mxu1 %v2632_v55 }
 0x278   :  { %1240 = vmatpush.bf16.msra.mxu2 %v2638_v56  ;;  %1253 = vmatpush.bf16.msra.mxu3 %v2674_v9 }
 0x27b   :  { %1215 = vmatpush.bf16.msra.mxu0 %v2651_v61  ;;  %1228 = vmatpush.bf16.msra.mxu1 %v2663_v3 }
 0x27c   :  { %1241 = vmatpush.bf16.msra.mxu2 %v2686_v15  ;;  %1254 = vmatpush.bf16.msra.mxu3 %v2698_v21 }
 0x27f   :  { %1216 = vmatpush.bf16.msra.mxu0 %v2696_v20  ;;  %1229 = vmatpush.bf16.msra.mxu1 %v2707_v26 }
 0x280   :  { %1242 = vmatpush.bf16.msra.mxu2 %v2716_v31  ;;  %1255 = vmatpush.bf16.msra.mxu3 %v2720_v32 }
 0x2de   :  { %v954_v47 = vpop.f32.mrf.mxu0  ;;  %v967_v45 = vpop.f32.mrf.mxu1 }
 0x2df   :  { %v997_v42 = vadd.f32 %v954_v47, %v940_v39  ;;  %v998_v48 = vadd.f32 %v967_v45, %v941_v5 }
 0x2e1   :  { %v1989_v27 = vmul.f32 -1.442695, %v997_v42  ;;  %v1990_v59 = vmul.f32 -1.442695, %v998_v48 }
 0x2e3   :  { %2187 = vpow2.f32 %v1989_v27 }
 0x2e4   :  { %2189 = vpow2.f32 %v1990_v59 }
 0x2e5   :  { %v980_v8 = vpop.f32.mrf.mxu2  ;;  %v993_v36 = vpop.f32.mrf.mxu3 }
 0x2e6   :  { %v999_v2 = vadd.f32 %v980_v8, %v942_v62  ;;  %v956_v19 = vpop.f32.mrf.mxu0  ;;  %v969_v51 = vpop.f32.mrf.mxu1  ;;  %v1000_v10 = vadd.f32 %v993_v36, %v943_v60 }
 0x2e8   :  { %v1991_v11 = vmul.f32 -1.442695, %v999_v2 }
 0x2e9   :  { %v2188_v34 = vpop.eup %2187 }
 0x2ea   :  { %v2190_v7 = vpop.eup %2189  ;;  %v1010_v35 = vadd.f32 1.0, %v2188_v34  ;;  %2191 = vpow2.f32 %v1991_v11 }
 0x2eb   :  { %v1011_v58 = vadd.f32 1.0, %v2190_v7 }
 0x2ec   :  { %2193 = vrcp.f32 %v1010_v35  ;;  %v1024_v45 = vand.u32 2147483648, %v1010_v35  ;;  %v1022_v27 = vand.u32 2147483647, %v1010_v35  ;;  %vm1018_vm10 = vweird.f32 %v1010_v35 }
 0x2ed   :  { %2195 = vrcp.f32 %v1011_v58  ;;  %v982_v23 = vpop.f32.mrf.mxu2  ;;  %v995_v29 = vpop.f32.mrf.mxu3  ;;  %v1039_v42 = vand.u32 2147483648, %v1011_v58  ;;  %v1037_v62 = vand.u32 2147483647, %v1011_v58  ;;  %vm1033_vm11 = vweird.f32 %v1011_v58 }
 0x2ee   :  { %v1025_v2 = vor.u32 1.1754944e-38, %v1024_v45  ;;  %vm1023_vm14 = vcmp.eq.f32.partialorder %v1022_v27, 8.507059e+37 }
 0x2ef   :  { %v1040_v51 = vor.u32 1.1754944e-38, %v1039_v42  ;;  %vm1038_vm15 = vcmp.eq.f32.partialorder %v1037_v62, 8.507059e+37 }
 0x2f0   :  { %v2192_v63 = vpop.eup %2191 }
 0x2f1   :  { %v1012_v40 = vadd.f32 1.0, %v2192_v63 }
 0x2f2   :  { %v2194_v14 = vpop.eup %2193 }
 0x2f3   :  { %v2196_v46 = vpop.eup %2195  ;;  %v1014_v52 = vmul.f32 %v2194_v14, %v1010_v35  ;;  %2197 = vrcp.f32 %v1012_v40  ;;  %vm1019_vm8 = vweird.f32 %v2194_v14  ;;  %vm1048_vm2 = vweird.f32 %v1012_v40 }
 0x2f4   :  { %v1029_v39 = vmul.f32 %v2196_v46, %v1011_v58  ;;  %2199 = vtanh.f32 %v1000_v10  ;;  %vm1034_vm9 = vweird.f32 %v2196_v46  ;;  %vm1020_vm12 = vmor %vm1018_vm10, %vm1019_vm8 }
 0x2f5   :  { %v1015_v5 = vsub.f32 1.0, %v1014_v52  ;;  %vm1035_vm13 = vmor %vm1033_vm11, %vm1034_vm9 }
 0x2f6   :  { %v1030_v47 = vsub.f32 1.0, %v1029_v39  ;;  %v1054_v39 = vand.u32 2147483648, %v1012_v40 }
 0x2f7   :  { %v1016_v48 = vmul.f32 %v2194_v14, %v1015_v5  ;;  %v1052_v5 = vand.u32 2147483647, %v1012_v40 }
 0x2f8   :  { %v1031_v59 = vmul.f32 %v2196_v46, %v1030_v47  ;;  %v1055_v47 = vor.u32 1.1754944e-38, %v1054_v39 }
 0x2f9   :  { %v2198_v8 = vpop.eup %2197  ;;  %v1017_v17 = vadd.f32 %v2194_v14, %v1016_v48  ;;  %vm1053_vm4 = vcmp.eq.f32.partialorder %v1052_v5, 8.507059e+37 }
 0x2fa   :  { %v1044_v36 = vmul.f32 %v2198_v8, %v1012_v40  ;;  %v1032_v19 = vadd.f32 %v2196_v46, %v1031_v59  ;;  %v2200_v34 = vpop.eup %2199  ;;  %vm1049_vm0 = vweird.f32 %v2198_v8 }
 0x2fb   :  { %v1021_v11 = vsel %vm1020_vm12, %v2194_v14, %v1017_v17  ;;  %vm1050_vm3 = vmor %vm1048_vm2, %vm1049_vm0 }
 0x2fc   :  { %v1045_v7 = vsub.f32 1.0, %v1044_v36  ;;  %v1026_v23 = vsel %vm1023_vm14, %v1025_v2, %v1021_v11  ;;  %v1036_v29 = vsel %vm1035_vm13, %v2196_v46, %v1032_v19  ;;  %vm1196_vm14 = vcmp.gt.s32.totalorder %v2893_v33, 4 }
 0x2fd   :  { %v1041_v63 = vsel %vm1038_vm15, %v1040_v51, %v1036_v29  ;;  %v1060_v60 = vmul.f32 %v2200_v34, %v1026_v23  ;;  %v3302_v51 = vld [vmem:[#allocation8_spill] sm:$0xff] }
 0x2fe   :  { %v1046_v10 = vmul.f32 %v2198_v8, %v1045_v7  ;;  %v1059_v52 = vmul.f32 %v1041_v63, %v2992_v22  ;;  %v1074_v11 = vunpack.c.l.bf16 %v3302_v51 }
 0x300   :  { %v1061_v35 = vadd.f32 %v1060_v60, %v1059_v52  ;;  %v1047_v58 = vadd.f32 %v2198_v8, %v1046_v10 }
 0x302   :  { %2201 = vtanh.f32 %v1061_v35  ;;  %v3038_v14 = vsel %vm1064_vm1, %v1061_v35, %v2992_v22  ;;  %v1051_v46 = vsel %vm1050_vm3, %v2198_v8, %v1047_v58  ;;  %v3301_v22 = vld [vmem:[#allocation7_spill] sm:$0xff] }
 0x303   :  { %v1056_v42 = vsel %vm1053_vm4, %v1055_v47, %v1051_v46  ;;  %v1073_v40 = vunpack.c.h.bf16 %v3301_v22  ;;  %v1075_v47 = vunpack.c.h.bf16 %v3302_v51 }
 0x308   :  { %v2202_v45 = vpop.eup %2201 }
 0x309   :  { %v1063_v48 = vmul.f32 %v2202_v45, %v1056_v42 }
 0x30b   :  { %v3041_v27 = vsel %vm1064_vm1, %v1063_v48, %v2995_v44  ;;  %v1072_v44 = vunpack.c.l.bf16 %v3301_v22 }
 0x30c   :  { %v1076_v59 = vpack.c.bf16 %v3041_v27, %v3041_v27 }
 0x30e   :  { %1085 = vmatmul.bf16.vlgmr.msrb.gmra.mxu0 %v1076_v59  ;;  %1098 = vmatmul.bf16.vlgmr.msrb.gmra.mxu1 %v1076_v59 }
 0x30f   :  { %1111 = vmatmul.bf16.vlgmr.msrb.gmra.mxu2 %v1076_v59  ;;  %1124 = vmatmul.bf16.vlgmr.msrb.gmra.mxu3 %v1076_v59 }
 0x310   :  { %1341 = vmatpush.bf16.msrb.mxu0 %v2438_v54  ;;  %1354 = vmatpush.bf16.msrb.mxu1 %v2446_v57 }
 0x311   :  { %1367 = vmatpush.bf16.msrb.mxu2 %v2466_v0  ;;  %1380 = vmatpush.bf16.msrb.mxu3 %v2477_v4 }
 0x314   :  { %1342 = vmatpush.bf16.msrb.mxu0 %v2469_v1  ;;  %1355 = vmatpush.bf16.msrb.mxu1 %v2484_v6 }
 0x315   :  { %1368 = vmatpush.bf16.msrb.mxu2 %v2505_v12  ;;  %1381 = vmatpush.bf16.msrb.mxu3 %v2517_v16 }
 0x318   :  { %1343 = vmatpush.bf16.msrb.mxu0 %v2509_v13  ;;  %1356 = vmatpush.bf16.msrb.mxu1 %v2523_v18 }
 0x319   :  { %1369 = vmatpush.bf16.msrb.mxu2 %v2541_v24  ;;  %1382 = vmatpush.bf16.msrb.mxu3 %v2553_v28 }
 0x31c   :  { %1344 = vmatpush.bf16.msrb.mxu0 %v2545_v25  ;;  %1357 = vmatpush.bf16.msrb.mxu1 %v2559_v30 }
 0x31d   :  { %1370 = vmatpush.bf16.msrb.mxu2 %v2580_v37  ;;  %1383 = vmatpush.bf16.msrb.mxu3 %v2592_v41 }
 0x320   :  { %1345 = vmatpush.bf16.msrb.mxu0 %v2584_v38  ;;  %1358 = vmatpush.bf16.msrb.mxu1 %v2598_v43 }
 0x321   :  { %1371 = vmatpush.bf16.msrb.mxu2 %v2616_v49  ;;  %1384 = vmatpush.bf16.msrb.mxu3 %v2628_v53 }
 0x324   :  { %1346 = vmatpush.bf16.msrb.mxu0 %v2620_v50  ;;  %1359 = vmatpush.bf16.msrb.mxu1 %v2632_v55 }
 0x325   :  { %1372 = vmatpush.bf16.msrb.mxu2 %v2638_v56  ;;  %1385 = vmatpush.bf16.msrb.mxu3 %v2674_v9 }
 0x328   :  { %1347 = vmatpush.bf16.msrb.mxu0 %v2651_v61  ;;  %1360 = vmatpush.bf16.msrb.mxu1 %v2663_v3 }
 0x329   :  { %1373 = vmatpush.bf16.msrb.mxu2 %v2686_v15  ;;  %1386 = vmatpush.bf16.msrb.mxu3 %v2698_v21 }
 0x32c   :  { %1348 = vmatpush.bf16.msrb.mxu0 %v2696_v20  ;;  %1361 = vmatpush.bf16.msrb.mxu1 %v2707_v26 }
 0x32d   :  { %1374 = vmatpush.bf16.msrb.mxu2 %v2716_v31  ;;  %1387 = vmatpush.bf16.msrb.mxu3 %v2720_v32 }
 0x38b   :  { %v1086_v62 = vpop.f32.mrf.mxu0  ;;  %v1099_v8 = vpop.f32.mrf.mxu1 }
 0x38c   :  { %v1129_v17 = vadd.f32 %v1086_v62, %v1072_v44  ;;  %v1130_v36 = vadd.f32 %v1099_v8, %v1073_v40 }
 0x38e   :  { %v1992_v2 = vmul.f32 -1.442695, %v1129_v17  ;;  %v1993_v19 = vmul.f32 -1.442695, %v1130_v36 }
 0x390   :  { %2203 = vpow2.f32 %v1992_v2 }
 0x391   :  { %2205 = vpow2.f32 %v1993_v19 }
 0x392   :  { %v1112_v34 = vpop.f32.mrf.mxu2  ;;  %v1125_v7 = vpop.f32.mrf.mxu3 }
 0x393   :  { %v1131_v23 = vadd.f32 %v1112_v34, %v1074_v11  ;;  %v1088_v29 = vpop.f32.mrf.mxu0  ;;  %v1101_v63 = vpop.f32.mrf.mxu1  ;;  %v1132_v48 = vadd.f32 %v1125_v7, %v1075_v47 }
 0x395   :  { %v1994_v60 = vmul.f32 -1.442695, %v1131_v23 }
 0x396   :  { %v2204_v10 = vpop.eup %2203 }
 0x397   :  { %v2206_v52 = vpop.eup %2205  ;;  %v1142_v35 = vadd.f32 1.0, %v2204_v10  ;;  %2207 = vpow2.f32 %v1994_v60 }
 0x398   :  { %v1143_v58 = vadd.f32 1.0, %v2206_v52 }
 0x399   :  { %2209 = vrcp.f32 %v1142_v35  ;;  %v1156_v8 = vand.u32 2147483648, %v1142_v35  ;;  %v1154_v2 = vand.u32 2147483647, %v1142_v35  ;;  %vm1150_vm7 = vweird.f32 %v1142_v35 }
 0x39a   :  { %2211 = vrcp.f32 %v1143_v58  ;;  %v1114_v39 = vpop.f32.mrf.mxu2  ;;  %v1127_v5 = vpop.f32.mrf.mxu3  ;;  %v1171_v17 = vand.u32 2147483648, %v1143_v58  ;;  %v1169_v11 = vand.u32 2147483647, %v1143_v58  ;;  %vm1165_vm8 = vweird.f32 %v1143_v58 }
 0x39b   :  { %v1157_v23 = vor.u32 1.1754944e-38, %v1156_v8  ;;  %vm1155_vm11 = vcmp.eq.f32.partialorder %v1154_v2, 8.507059e+37 }
 0x39c   :  { %v1172_v63 = vor.u32 1.1754944e-38, %v1171_v17  ;;  %vm1170_vm12 = vcmp.eq.f32.partialorder %v1169_v11, 8.507059e+37 }
 0x39d   :  { %v2208_v46 = vpop.eup %2207 }
 0x39e   :  { %v1144_v45 = vadd.f32 1.0, %v2208_v46 }
 0x39f   :  { %v2210_v42 = vpop.eup %2209 }
 0x3a0   :  { %v2212_v59 = vpop.eup %2211  ;;  %v1146_v22 = vmul.f32 %v2210_v42, %v1142_v35  ;;  %2213 = vrcp.f32 %v1144_v45  ;;  %vm1151_vm5 = vweird.f32 %v2210_v42  ;;  %vm1180_vm15 = vweird.f32 %v1144_v45 }
 0x3a1   :  { %v1161_v44 = vmul.f32 %v2212_v59, %v1143_v58  ;;  %2215 = vtanh.f32 %v1132_v48  ;;  %vm1166_vm6 = vweird.f32 %v2212_v59  ;;  %vm1152_vm9 = vmor %vm1150_vm7, %vm1151_vm5 }
 0x3a2   :  { %v1147_v40 = vsub.f32 1.0, %v1146_v22  ;;  %vm1167_vm10 = vmor %vm1165_vm8, %vm1166_vm6 }
 0x3a3   :  { %v1162_v62 = vsub.f32 1.0, %v1161_v44  ;;  %v1186_v44 = vand.u32 2147483648, %v1144_v45 }
 0x3a4   :  { %v1148_v36 = vmul.f32 %v2210_v42, %v1147_v40  ;;  %v1184_v40 = vand.u32 2147483647, %v1144_v45 }
 0x3a5   :  { %v1163_v19 = vmul.f32 %v2212_v59, %v1162_v62  ;;  %v1187_v62 = vor.u32 1.1754944e-38, %v1186_v44 }
 0x3a6   :  { %v2214_v34 = vpop.eup %2213  ;;  %v1149_v51 = vadd.f32 %v2210_v42, %v1148_v36  ;;  %vm1185_vm1 = vcmp.eq.f32.partialorder %v1184_v40, 8.507059e+37 }
 0x3a7   :  { %v1176_v7 = vmul.f32 %v2214_v34, %v1144_v45  ;;  %v1164_v29 = vadd.f32 %v2212_v59, %v1163_v19  ;;  %v2216_v10 = vpop.eup %2215  ;;  %vm1181_vm13 = vweird.f32 %v2214_v34 }
 0x3a8   :  { %v1153_v60 = vsel %vm1152_vm9, %v2210_v42, %v1149_v51  ;;  %vm1182_vm0 = vmor %vm1180_vm15, %vm1181_vm13 }
 0x3a9   :  { %v1177_v52 = vsub.f32 1.0, %v1176_v7  ;;  %v1158_v39 = vsel %vm1155_vm11, %v1157_v23, %v1153_v60  ;;  %v1168_v5 = vsel %vm1167_vm10, %v2212_v59, %v1164_v29  ;;  %vm1328_vm11 = vcmp.gt.s32.totalorder %v2893_v33, 5 }
 0x3aa   :  { %v1173_v46 = vsel %vm1170_vm12, %v1172_v63, %v1168_v5  ;;  %v1192_v47 = vmul.f32 %v2216_v10, %v1158_v39 }
 0x3ab   :  { %v1178_v48 = vmul.f32 %v2214_v34, %v1177_v52  ;;  %v1191_v22 = vmul.f32 %v1173_v46, %v3038_v14 }
 0x3ad   :  { %v1193_v35 = vadd.f32 %v1192_v47, %v1191_v22  ;;  %v1179_v58 = vadd.f32 %v2214_v34, %v1178_v48 }
 0x3af   :  { %2217 = vtanh.f32 %v1193_v35  ;;  %v3084_v42 = vsel %vm1196_vm14, %v1193_v35, %v3038_v14  ;;  %v1183_v59 = vsel %vm1182_vm0, %v2214_v34, %v1179_v58 }
 0x3b0   :  { %v1188_v17 = vsel %vm1185_vm1, %v1187_v62, %v1183_v59 }
 0x3b5   :  { %v2218_v8 = vpop.eup %2217 }
 0x3b6   :  { %v1195_v36 = vmul.f32 %v2218_v8, %v1188_v17 }
 0x3b8   :  { %v3087_v2 = vsel %vm1196_vm14, %v1195_v36, %v3041_v27 }
 0x3b9   :  { %v1208_v19 = vpack.c.bf16 %v3087_v2, %v3087_v2 }
 0x3bb   :  { %1217 = vmatmul.bf16.vlgmr.msra.gmra.mxu0 %v1208_v19  ;;  %1230 = vmatmul.bf16.vlgmr.msra.gmra.mxu1 %v1208_v19 }
 0x3bc   :  { %1243 = vmatmul.bf16.vlgmr.msra.gmra.mxu2 %v1208_v19  ;;  %1256 = vmatmul.bf16.vlgmr.msra.gmra.mxu3 %v1208_v19 }
 0x3bd   :  { %1473 = vmatpush.bf16.msra.mxu0 %v2438_v54  ;;  %1486 = vmatpush.bf16.msra.mxu1 %v2446_v57  ;;  %v3303_v54 = vld [vmem:[#allocation9_spill] sm:$0xff] }
 0x3be   :  { %1499 = vmatpush.bf16.msra.mxu2 %v2466_v0  ;;  %1512 = vmatpush.bf16.msra.mxu3 %v2477_v4  ;;  %v1204_v57 = vunpack.c.l.bf16 %v3303_v54  ;;  %v1205_v0 = vunpack.c.h.bf16 %v3303_v54 }
 0x3c1   :  { %1474 = vmatpush.bf16.msra.mxu0 %v2469_v1  ;;  %1487 = vmatpush.bf16.msra.mxu1 %v2484_v6 }
 0x3c2   :  { %1500 = vmatpush.bf16.msra.mxu2 %v2505_v12  ;;  %1513 = vmatpush.bf16.msra.mxu3 %v2517_v16 }
 0x3c5   :  { %1475 = vmatpush.bf16.msra.mxu0 %v2509_v13  ;;  %1488 = vmatpush.bf16.msra.mxu1 %v2523_v18  ;;  %v3304_v18 = vld [vmem:[#allocation10_spill] sm:$0xff] }
 0x3c6   :  { %1501 = vmatpush.bf16.msra.mxu2 %v2541_v24  ;;  %1514 = vmatpush.bf16.msra.mxu3 %v2553_v28  ;;  %v1206_v24 = vunpack.c.l.bf16 %v3304_v18 }
 0x3c9   :  { %1476 = vmatpush.bf16.msra.mxu0 %v2545_v25  ;;  %1489 = vmatpush.bf16.msra.mxu1 %v2559_v30 }
 0x3ca   :  { %1502 = vmatpush.bf16.msra.mxu2 %v2580_v37  ;;  %1515 = vmatpush.bf16.msra.mxu3 %v2592_v41 }
 0x3cd   :  { %1477 = vmatpush.bf16.msra.mxu0 %v2584_v38  ;;  %1490 = vmatpush.bf16.msra.mxu1 %v2598_v43 }
 0x3ce   :  { %1503 = vmatpush.bf16.msra.mxu2 %v2616_v49  ;;  %1516 = vmatpush.bf16.msra.mxu3 %v2628_v53 }
 0x3d1   :  { %1478 = vmatpush.bf16.msra.mxu0 %v2620_v50  ;;  %1491 = vmatpush.bf16.msra.mxu1 %v2632_v55 }
 0x3d2   :  { %1504 = vmatpush.bf16.msra.mxu2 %v2638_v56  ;;  %1517 = vmatpush.bf16.msra.mxu3 %v2674_v9 }
 0x3d5   :  { %1479 = vmatpush.bf16.msra.mxu0 %v2651_v61  ;;  %1492 = vmatpush.bf16.msra.mxu1 %v2663_v3  ;;  %v1207_v3 = vunpack.c.h.bf16 %v3304_v18 }
 0x3d6   :  { %1505 = vmatpush.bf16.msra.mxu2 %v2686_v15  ;;  %1518 = vmatpush.bf16.msra.mxu3 %v2698_v21 }
 0x3d9   :  { %1480 = vmatpush.bf16.msra.mxu0 %v2696_v20  ;;  %1493 = vmatpush.bf16.msra.mxu1 %v2707_v26 }
 0x3da   :  { %1506 = vmatpush.bf16.msra.mxu2 %v2716_v31  ;;  %1519 = vmatpush.bf16.msra.mxu3 %v2720_v32 }
 0x438   :  { %v1218_v1 = vpop.f32.mrf.mxu0  ;;  %v1231_v4 = vpop.f32.mrf.mxu1 }
 0x439   :  { %v1261_v6 = vadd.f32 %v1218_v1, %v1204_v57  ;;  %v1262_v12 = vadd.f32 %v1231_v4, %v1205_v0 }
 0x43b   :  { %v1995_v13 = vmul.f32 -1.442695, %v1261_v6  ;;  %v1996_v16 = vmul.f32 -1.442695, %v1262_v12 }
 0x43d   :  { %2219 = vpow2.f32 %v1995_v13 }
 0x43e   :  { %2221 = vpow2.f32 %v1996_v16 }
 0x43f   :  { %v1244_v25 = vpop.f32.mrf.mxu2  ;;  %v1257_v28 = vpop.f32.mrf.mxu3 }
 0x440   :  { %v1263_v30 = vadd.f32 %v1244_v25, %v1206_v24  ;;  %v1220_v37 = vpop.f32.mrf.mxu0  ;;  %v1233_v38 = vpop.f32.mrf.mxu1  ;;  %v1264_v20 = vadd.f32 %v1257_v28, %v1207_v3 }
 0x442   :  { %v1997_v41 = vmul.f32 -1.442695, %v1263_v30 }
 0x443   :  { %v2220_v43 = vpop.eup %2219 }
 0x444   :  { %v2222_v49 = vpop.eup %2221  ;;  %v1274_v50 = vadd.f32 1.0, %v2220_v43  ;;  %2223 = vpow2.f32 %v1997_v41 }
 0x445   :  { %v1275_v53 = vadd.f32 1.0, %v2222_v49 }
 0x446   :  { %2225 = vrcp.f32 %v1274_v50  ;;  %v1288_v27 = vand.u32 2147483648, %v1274_v50  ;;  %v1286_v34 = vand.u32 2147483647, %v1274_v50  ;;  %vm1282_vm4 = vweird.f32 %v1274_v50 }
 0x447   :  { %2227 = vrcp.f32 %v1275_v53  ;;  %v1246_v55 = vpop.f32.mrf.mxu2  ;;  %v1259_v56 = vpop.f32.mrf.mxu3  ;;  %v1303_v45 = vand.u32 2147483648, %v1275_v53  ;;  %v1301_v7 = vand.u32 2147483647, %v1275_v53  ;;  %vm1297_vm5 = vweird.f32 %v1275_v53 }
 0x448   :  { %v1289_v60 = vor.u32 1.1754944e-38, %v1288_v27  ;;  %vm1287_vm8 = vcmp.eq.f32.partialorder %v1286_v34, 8.507059e+37 }
 0x449   :  { %v1304_v52 = vor.u32 1.1754944e-38, %v1303_v45  ;;  %vm1302_vm9 = vcmp.eq.f32.partialorder %v1301_v7, 8.507059e+37 }
 0x44a   :  { %v2224_v61 = vpop.eup %2223 }
 0x44b   :  { %v1276_v9 = vadd.f32 1.0, %v2224_v61 }
 0x44c   :  { %v2226_v15 = vpop.eup %2225 }
 0x44d   :  { %v2228_v21 = vpop.eup %2227  ;;  %v1278_v26 = vmul.f32 %v2226_v15, %v1274_v50  ;;  %2229 = vrcp.f32 %v1276_v9  ;;  %vm1283_vm2 = vweird.f32 %v2226_v15  ;;  %v1318_v62 = vand.u32 2147483648, %v1276_v9 }
 0x44e   :  { %v1293_v31 = vmul.f32 %v2228_v21, %v1275_v53  ;;  %2231 = vtanh.f32 %v1264_v20  ;;  %vm1298_vm3 = vweird.f32 %v2228_v21  ;;  %vm1284_vm6 = vmor %vm1282_vm4, %vm1283_vm2  ;;  %vm1312_vm12 = vweird.f32 %v1276_v9 }
 0x44f   :  { %v1279_v32 = vsub.f32 1.0, %v1278_v26  ;;  %vm1299_vm7 = vmor %vm1297_vm5, %vm1298_vm3  ;;  %v1316_v17 = vand.u32 2147483647, %v1276_v9  ;;  %v1319_v19 = vor.u32 1.1754944e-38, %v1318_v62 }
 0x450   :  { %v1294_v14 = vsub.f32 1.0, %v1293_v31 }
 0x451   :  { %v1280_v11 = vmul.f32 %v2226_v15, %v1279_v32  ;;  %vm1317_vm14 = vcmp.eq.f32.partialorder %v1316_v17, 8.507059e+37 }
 0x452   :  { %v1295_v51 = vmul.f32 %v2228_v21, %v1294_v14 }
 0x453   :  { %v2230_v23 = vpop.eup %2229  ;;  %v1281_v29 = vadd.f32 %v2226_v15, %v1280_v11 }
 0x454   :  { %v1308_v63 = vmul.f32 %v2230_v23, %v1276_v9  ;;  %v1296_v10 = vadd.f32 %v2228_v21, %v1295_v51  ;;  %v2232_v5 = vpop.eup %2231  ;;  %vm1313_vm10 = vweird.f32 %v2230_v23 }
 0x455   :  { %v1285_v39 = vsel %vm1284_vm6, %v2226_v15, %v1281_v29  ;;  %vm1314_vm13 = vmor %vm1312_vm12, %vm1313_vm10 }
 0x456   :  { %v1309_v46 = vsub.f32 1.0, %v1308_v63  ;;  %v1290_v47 = vsel %vm1287_vm8, %v1289_v60, %v1285_v39  ;;  %v1300_v48 = vsel %vm1299_vm7, %v2228_v21, %v1296_v10  ;;  %vm1460_vm8 = vcmp.gt.s32.totalorder %v2893_v33, 6 }
 0x457   :  { %v1305_v22 = vsel %vm1302_vm9, %v1304_v52, %v1300_v48  ;;  %v1324_v35 = vmul.f32 %v2232_v5, %v1290_v47 }
 0x458   :  { %v1310_v58 = vmul.f32 %v2230_v23, %v1309_v46  ;;  %v1323_v44 = vmul.f32 %v1305_v22, %v3084_v42 }
 0x45a   :  { %v1325_v40 = vadd.f32 %v1324_v35, %v1323_v44  ;;  %v1311_v59 = vadd.f32 %v2230_v23, %v1310_v58 }
 0x45c   :  { %2233 = vtanh.f32 %v1325_v40  ;;  %v3130_v8 = vsel %vm1328_vm11, %v1325_v40, %v3084_v42  ;;  %v1315_v36 = vsel %vm1314_vm13, %v2230_v23, %v1311_v59  ;;  %v3305_v42 = vld [vmem:[#allocation11_spill] sm:$0xff] }
 0x45d   :  { %v1320_v57 = vsel %vm1317_vm14, %v1319_v19, %v1315_v36  ;;  %v1336_v6 = vunpack.c.l.bf16 %v3305_v42  ;;  %v1337_v12 = vunpack.c.h.bf16 %v3305_v42 }
 0x462   :  { %v2234_v54 = vpop.eup %2233 }
 0x463   :  { %v1327_v0 = vmul.f32 %v2234_v54, %v1320_v57 }
 0x465   :  { %v3133_v1 = vsel %vm1328_vm11, %v1327_v0, %v3087_v2  ;;  %v3306_v2 = vld [vmem:[#allocation12_spill] sm:$0xff] }
 0x466   :  { %v1340_v4 = vpack.c.bf16 %v3133_v1, %v3133_v1  ;;  %v1338_v30 = vunpack.c.l.bf16 %v3306_v2  ;;  %v1339_v20 = vunpack.c.h.bf16 %v3306_v2 }
 0x468   :  { %1349 = vmatmul.bf16.vlgmr.msrb.gmra.mxu0 %v1340_v4  ;;  %1362 = vmatmul.bf16.vlgmr.msrb.gmra.mxu1 %v1340_v4 }
 0x469   :  { %1375 = vmatmul.bf16.vlgmr.msrb.gmra.mxu2 %v1340_v4  ;;  %1388 = vmatmul.bf16.vlgmr.msrb.gmra.mxu3 %v1340_v4 }
 0x4e5   :  { %v1350_v13 = vpop.f32.mrf.mxu0  ;;  %v1363_v16 = vpop.f32.mrf.mxu1 }
 0x4e6   :  { %v1393_v18 = vadd.f32 %v1350_v13, %v1336_v6  ;;  %v1394_v24 = vadd.f32 %v1363_v16, %v1337_v12 }
 0x4e8   :  { %v1998_v25 = vmul.f32 -1.442695, %v1393_v18  ;;  %v1999_v28 = vmul.f32 -1.442695, %v1394_v24 }
 0x4ea   :  { %2235 = vpow2.f32 %v1998_v25 }
 0x4eb   :  { %2237 = vpow2.f32 %v1999_v28 }
 0x4ec   :  { %v1376_v37 = vpop.f32.mrf.mxu2  ;;  %v1389_v38 = vpop.f32.mrf.mxu3 }
 0x4ed   :  { %v1395_v41 = vadd.f32 %v1376_v37, %v1338_v30  ;;  %v1352_v43 = vpop.f32.mrf.mxu0  ;;  %v1365_v49 = vpop.f32.mrf.mxu1  ;;  %v1396_v31 = vadd.f32 %v1389_v38, %v1339_v20 }
 0x4ef   :  { %v2000_v50 = vmul.f32 -1.442695, %v1395_v41 }
 0x4f0   :  { %v2236_v53 = vpop.eup %2235 }
 0x4f1   :  { %v2238_v55 = vpop.eup %2237  ;;  %v1406_v56 = vadd.f32 1.0, %v2236_v53  ;;  %2239 = vpow2.f32 %v2000_v50 }
 0x4f2   :  { %v1407_v61 = vadd.f32 1.0, %v2238_v55 }
 0x4f3   :  { %2241 = vrcp.f32 %v1406_v56  ;;  %v1420_v34 = vand.u32 2147483648, %v1406_v56  ;;  %v1418_v23 = vand.u32 2147483647, %v1406_v56  ;;  %vm1414_vm1 = vweird.f32 %v1406_v56 }
 0x4f4   :  { %2243 = vrcp.f32 %v1407_v61  ;;  %v1378_v3 = vpop.f32.mrf.mxu2  ;;  %v1391_v9 = vpop.f32.mrf.mxu3  ;;  %v1435_v51 = vand.u32 2147483648, %v1407_v61  ;;  %v1433_v63 = vand.u32 2147483647, %v1407_v61  ;;  %vm1429_vm2 = vweird.f32 %v1407_v61 }
 0x4f5   :  { %v1421_v39 = vor.u32 1.1754944e-38, %v1420_v34  ;;  %vm1419_vm5 = vcmp.eq.f32.partialorder %v1418_v23, 8.507059e+37 }
 0x4f6   :  { %v1436_v46 = vor.u32 1.1754944e-38, %v1435_v51  ;;  %vm1434_vm6 = vcmp.eq.f32.partialorder %v1433_v63, 8.507059e+37 }
 0x4f7   :  { %v2240_v15 = vpop.eup %2239 }
 0x4f8   :  { %v1408_v21 = vadd.f32 1.0, %v2240_v15 }
 0x4f9   :  { %v2242_v26 = vpop.eup %2241 }
 0x4fa   :  { %v2244_v32 = vpop.eup %2243  ;;  %v1410_v14 = vmul.f32 %v2242_v26, %v1406_v56  ;;  %2245 = vrcp.f32 %v1408_v21  ;;  %vm1415_vm15 = vweird.f32 %v2242_v26  ;;  %v1450_v19 = vand.u32 2147483648, %v1408_v21 }
 0x4fb   :  { %v1425_v27 = vmul.f32 %v2244_v32, %v1407_v61  ;;  %2247 = vtanh.f32 %v1396_v31  ;;  %vm1430_vm0 = vweird.f32 %v2244_v32  ;;  %vm1416_vm3 = vmor %vm1414_vm1, %vm1415_vm15  ;;  %vm1444_vm9 = vweird.f32 %v1408_v21 }
 0x4fc   :  { %v1411_v45 = vsub.f32 1.0, %v1410_v14  ;;  %vm1431_vm4 = vmor %vm1429_vm2, %vm1430_vm0  ;;  %v1448_v57 = vand.u32 2147483647, %v1408_v21  ;;  %v1451_v4 = vor.u32 1.1754944e-38, %v1450_v19 }
 0x4fd   :  { %v1426_v11 = vsub.f32 1.0, %v1425_v27 }
 0x4fe   :  { %v1412_v7 = vmul.f32 %v2242_v26, %v1411_v45  ;;  %vm1449_vm11 = vcmp.eq.f32.partialorder %v1448_v57, 8.507059e+37 }
 0x4ff   :  { %v1427_v29 = vmul.f32 %v2244_v32, %v1426_v11 }
 0x500   :  { %v2246_v60 = vpop.eup %2245  ;;  %v1413_v10 = vadd.f32 %v2242_v26, %v1412_v7 }
 0x501   :  { %v1440_v52 = vmul.f32 %v2246_v60, %v1408_v21  ;;  %v1428_v5 = vadd.f32 %v2244_v32, %v1427_v29  ;;  %v2248_v48 = vpop.eup %2247  ;;  %vm1445_vm7 = vweird.f32 %v2246_v60 }
 0x502   :  { %v1417_v47 = vsel %vm1416_vm3, %v2242_v26, %v1413_v10  ;;  %vm1446_vm10 = vmor %vm1444_vm9, %vm1445_vm7 }
 0x503   :  { %v1441_v22 = vsub.f32 1.0, %v1440_v52  ;;  %v1422_v35 = vsel %vm1419_vm5, %v1421_v39, %v1417_v47  ;;  %v1432_v58 = vsel %vm1431_vm4, %v2244_v32, %v1428_v5  ;;  %vm1592_vm4 = vcmp.gt.s32.totalorder %v2893_v33, 7 }
 0x504   :  { %v1437_v44 = vsel %vm1434_vm6, %v1436_v46, %v1432_v58  ;;  %v1456_v40 = vmul.f32 %v2248_v48, %v1422_v35 }
 0x505   :  { %v1442_v59 = vmul.f32 %v2246_v60, %v1441_v22  ;;  %v1455_v62 = vmul.f32 %v1437_v44, %v3130_v8 }
 0x507   :  { %v1457_v17 = vadd.f32 %v1456_v40, %v1455_v62  ;;  %v1443_v36 = vadd.f32 %v2246_v60, %v1442_v59 }
 0x509   :  { %2249 = vtanh.f32 %v1457_v17  ;;  %v3144_v54 = vsel %vm1460_vm8, %v1457_v17, %v3130_v8  ;;  %v1447_v0 = vsel %vm1446_vm10, %v2246_v60, %v1443_v36  ;;  %v3307_v8 = vld [vmem:[#allocation13_spill] sm:$0xff] }
 0x50a   :  { %v1452_v6 = vsel %vm1449_vm11, %v1451_v4, %v1447_v0  ;;  %v1468_v18 = vunpack.c.l.bf16 %v3307_v8  ;;  %v1469_v24 = vunpack.c.h.bf16 %v3307_v8 }
 0x50f   :  { %v2250_v42 = vpop.eup %2249 }
 0x510   :  { %v1459_v12 = vmul.f32 %v2250_v42, %v1452_v6 }
 0x512   :  { %v3147_v13 = vsel %vm1460_vm8, %v1459_v12, %v3133_v1  ;;  %v3308_v1 = vld [vmem:[#allocation14_spill] sm:$0xff] }
 0x513   :  { %v1472_v16 = vpack.c.bf16 %v3147_v13, %v3147_v13  ;;  %v1470_v41 = vunpack.c.l.bf16 %v3308_v1  ;;  %v1471_v31 = vunpack.c.h.bf16 %v3308_v1 }
 0x515   :  { %1481 = vmatmul.bf16.vlgmr.msra.gmra.mxu0 %v1472_v16  ;;  %1494 = vmatmul.bf16.vlgmr.msra.gmra.mxu1 %v1472_v16 }
 0x516   :  { %1507 = vmatmul.bf16.vlgmr.msra.gmra.mxu2 %v1472_v16  ;;  %1520 = vmatmul.bf16.vlgmr.msra.gmra.mxu3 %v1472_v16 }
 0x592   :  { %v1482_v25 = vpop.f32.mrf.mxu0  ;;  %v1495_v28 = vpop.f32.mrf.mxu1 }
 0x593   :  { %v1525_v2 = vadd.f32 %v1482_v25, %v1468_v18  ;;  %v1526_v30 = vadd.f32 %v1495_v28, %v1469_v24 }
 0x595   :  { %v2001_v37 = vmul.f32 -1.442695, %v1525_v2  ;;  %v2002_v38 = vmul.f32 -1.442695, %v1526_v30 }
 0x597   :  { %2251 = vpow2.f32 %v2001_v37 }
 0x598   :  { %2253 = vpow2.f32 %v2002_v38 }
 0x599   :  { %v1508_v43 = vpop.f32.mrf.mxu2  ;;  %v1521_v49 = vpop.f32.mrf.mxu3 }
 0x59a   :  { %v1527_v50 = vadd.f32 %v1508_v43, %v1470_v41  ;;  %v1484_v53 = vpop.f32.mrf.mxu0  ;;  %v1497_v55 = vpop.f32.mrf.mxu1  ;;  %v1528_v27 = vadd.f32 %v1521_v49, %v1471_v31 }
 0x59c   :  { %v2003_v56 = vmul.f32 -1.442695, %v1527_v50 }
 0x59d   :  { %v2252_v61 = vpop.eup %2251 }
 0x59e   :  { %v2254_v3 = vpop.eup %2253  ;;  %v1538_v9 = vadd.f32 1.0, %v2252_v61  ;;  %2255 = vpow2.f32 %v2003_v56 }
 0x59f   :  { %v1539_v15 = vadd.f32 1.0, %v2254_v3 }
 0x5a0   :  { %2257 = vrcp.f32 %v1538_v9  ;;  %v1552_v23 = vand.u32 2147483648, %v1538_v9  ;;  %v1550_v60 = vand.u32 2147483647, %v1538_v9  ;;  %vm1546_vm14 = vweird.f32 %v1538_v9 }
 0x5a1   :  { %2259 = vrcp.f32 %v1539_v15  ;;  %v1510_v20 = vpop.f32.mrf.mxu2  ;;  %v1523_v21 = vpop.f32.mrf.mxu3  ;;  %v1567_v29 = vand.u32 2147483648, %v1539_v15  ;;  %v1565_v52 = vand.u32 2147483647, %v1539_v15  ;;  %vm1561_vm15 = vweird.f32 %v1539_v15 }
 0x5a2   :  { %v1553_v47 = vor.u32 1.1754944e-38, %v1552_v23  ;;  %vm1551_vm2 = vcmp.eq.f32.partialorder %v1550_v60, 8.507059e+37 }
 0x5a3   :  { %v1568_v22 = vor.u32 1.1754944e-38, %v1567_v29  ;;  %vm1566_vm3 = vcmp.eq.f32.partialorder %v1565_v52, 8.507059e+37 }
 0x5a4   :  { %v2256_v26 = vpop.eup %2255 }
 0x5a5   :  { %v1540_v32 = vadd.f32 1.0, %v2256_v26 }
 0x5a6   :  { %v2258_v14 = vpop.eup %2257 }
 0x5a7   :  { %v2260_v45 = vpop.eup %2259  ;;  %v1542_v11 = vmul.f32 %v2258_v14, %v1538_v9  ;;  %2261 = vrcp.f32 %v1540_v32  ;;  %vm1547_vm12 = vweird.f32 %v2258_v14  ;;  %v1582_v4 = vand.u32 2147483648, %v1540_v32 }
 0x5a8   :  { %v1557_v34 = vmul.f32 %v2260_v45, %v1539_v15  ;;  %2263 = vtanh.f32 %v1528_v27  ;;  %vm1562_vm13 = vweird.f32 %v2260_v45  ;;  %vm1548_vm0 = vmor %vm1546_vm14, %vm1547_vm12  ;;  %vm1576_vm6 = vweird.f32 %v1540_v32 }
 0x5a9   :  { %v1543_v51 = vsub.f32 1.0, %v1542_v11  ;;  %vm1563_vm1 = vmor %vm1561_vm15, %vm1562_vm13  ;;  %v1580_v6 = vand.u32 2147483647, %v1540_v32  ;;  %v1583_v16 = vor.u32 1.1754944e-38, %v1582_v4 }
 0x5aa   :  { %v1558_v7 = vsub.f32 1.0, %v1557_v34 }
 0x5ab   :  { %v1544_v63 = vmul.f32 %v2258_v14, %v1543_v51  ;;  %vm1581_vm8 = vcmp.eq.f32.partialorder %v1580_v6, 8.507059e+37 }
 0x5ac   :  { %v1559_v10 = vmul.f32 %v2260_v45, %v1558_v7 }
 0x5ad   :  { %v2262_v39 = vpop.eup %2261  ;;  %v1545_v5 = vadd.f32 %v2258_v14, %v1544_v63 }
 0x5ae   :  { %v1572_v46 = vmul.f32 %v2262_v39, %v1540_v32  ;;  %v1560_v48 = vadd.f32 %v2260_v45, %v1559_v10  ;;  %v2264_v58 = vpop.eup %2263  ;;  %vm1577_vm5 = vweird.f32 %v2262_v39 }
 0x5af   :  { %v1549_v35 = vsel %vm1548_vm0, %v2258_v14, %v1545_v5  ;;  %vm1578_vm7 = vmor %vm1576_vm6, %vm1577_vm5 }
 0x5b0   :  { %v1573_v44 = vsub.f32 1.0, %v1572_v46  ;;  %v1554_v40 = vsel %vm1551_vm2, %v1553_v47, %v1549_v35  ;;  %v1564_v59 = vsel %vm1563_vm1, %v2260_v45, %v1560_v48 }
 0x5b1   :  { %v1569_v62 = vsel %vm1566_vm3, %v1568_v22, %v1564_v59  ;;  %v1588_v17 = vmul.f32 %v2264_v58, %v1554_v40 }
 0x5b2   :  { %v1574_v36 = vmul.f32 %v2262_v39, %v1573_v44  ;;  %v1587_v19 = vmul.f32 %v1569_v62, %v3144_v54 }
 0x5b4   :  { %v1589_v57 = vadd.f32 %v1588_v17, %v1587_v19  ;;  %v1575_v0 = vadd.f32 %v2262_v39, %v1574_v36 }
 0x5b6   :  { %2265 = vtanh.f32 %v1589_v57  ;;  %v1594_v42 = vsel %vm1592_vm4, %v1589_v57, %v3144_v54  ;;  %v1579_v12 = vsel %vm1578_vm7, %v2262_v39, %v1575_v0 }
 0x5b7   :  { %1596 = vst [vmem:[#allocation3] sm:$0xff] %v1594_v42  ;;  %v1584_v18 = vsel %vm1581_vm8, %v1583_v16, %v1579_v12 }
 0x5bc   :  { %v2266_v8 = vpop.eup %2265 }
 0x5bd   :  { %v1591_v24 = vmul.f32 %v2266_v8, %v1584_v18 }
 0x5bf   :  { %v1593_v25 = vsel %vm1592_vm4, %v1591_v24, %v3147_v13 }
 0x5c0   :  { %1595 = vst [vmem:[#allocation2] sm:$0xff] %v1593_v25 }
 0x5c1 PF:  { %v2062_v54 = vld [vmem:[%s3280_s6 + $0x70] sm:$0xf]  ;;  %v2135_v2 = vld [vmem:[%s3280_s6 + $0x74] sm:$0xf0]  ;;  %v2134_v33 = vld [vmem:[%s3280_s6 + $0x74] sm:$0xf] }
 0x5c2   :  { %v1602_v28 = vld [vmem:[#allocation3] sm:$0xff]  ;;  %v2063_v30 = vor.u32 %v2135_v2, %v2062_v54  ;;  %v2064_v13 = vld [vmem:[%s3280_s6 + $0x78] sm:$0xf0]  ;;  %v2054_v37 = vld [vmem:[%s3280_s6 + $0x60] sm:$0xf] }
 0x5c3   :  { %1603 = vst [vmem:[%s3284_s10] sm:$0xff] %v1602_v28  ;;  %v2067_v38 = vor.u32 %v2134_v33, %v2064_v13  ;;  %v2133_v1 = vld [vmem:[%s3280_s6 + $0x64] sm:$0xf0]  ;;  %v2132_v41 = vld [vmem:[%s3280_s6 + $0x64] sm:$0xf]  ;;  %v2056_v43 = vld [vmem:[%s3280_s6 + $0x68] sm:$0xf0] }
 0x5c4   :  { %1707 = vmatpush.bf16.msra.mxu0 %v2063_v30  ;;  %v2055_v49 = vor.u32 %v2133_v1, %v2054_v37  ;;  %v2059_v50 = vor.u32 %v2132_v41, %v2056_v43  ;;  %v2046_v53 = vld [vmem:[%s3280_s6 + $0x50] sm:$0xf]  ;;  %v2131_v55 = vld [vmem:[%s3280_s6 + $0x54] sm:$0xf0]  ;;  %v2130_v56 = vld [vmem:[%s3280_s6 + $0x54] sm:$0xf] }
 0x5c5   :  { %1720 = vmatpush.bf16.msra.mxu1 %v2067_v38  ;;  %v2048_v61 = vld [vmem:[%s3280_s6 + $0x58] sm:$0xf0]  ;;  %v2047_v3 = vor.u32 %v2131_v55, %v2046_v53  ;;  %v2038_v15 = vld [vmem:[%s3280_s6 + $0x40] sm:$0xf]  ;;  %v2129_v20 = vld [vmem:[%s3280_s6 + $0x44] sm:$0xf0] }
 0x5c6   :  { %v2051_v9 = vor.u32 %v2130_v56, %v2048_v61  ;;  %v2128_v21 = vld [vmem:[%s3280_s6 + $0x44] sm:$0xf]  ;;  %v2040_v26 = vld [vmem:[%s3280_s6 + $0x48] sm:$0xf0]  ;;  %v2039_v31 = vor.u32 %v2129_v20, %v2038_v15  ;;  %v2030_v27 = vld [vmem:[%s3280_s6 + $0x30] sm:$0xf] }
 0x5c7   :  { %v1600_v32 = vld [vmem:[#allocation2] sm:$0xff]  ;;  %v2043_v14 = vor.u32 %v2128_v21, %v2040_v26  ;;  %v2127_v45 = vld [vmem:[%s3280_s6 + $0x34] sm:$0xf0]  ;;  %v2126_v11 = vld [vmem:[%s3280_s6 + $0x34] sm:$0xf] }
 0x5c8   :  { %1708 = vmatpush.bf16.msra.mxu0 %v2055_v49  ;;  %1601 = vst [vmem:[%s3283_s9] sm:$0xff] %v1600_v32  ;;  %v2032_v34 = vld [vmem:[%s3280_s6 + $0x38] sm:$0xf0]  ;;  %v2031_v51 = vor.u32 %v2127_v45, %v2030_v27  ;;  %v2022_v23 = vld [vmem:[%s3280_s6 + $0x20] sm:$0xf]  ;;  %v2125_v29 = vld [vmem:[%s3280_s6 + $0x24] sm:$0xf0]  ;;  %v1604_v17 = vpack.c.bf16 %v1600_v32, %v1600_v32 }
 0x5c9   :  { %1721 = vmatpush.bf16.msra.mxu1 %v2059_v50  ;;  %v2035_v7 = vor.u32 %v2126_v11, %v2032_v34  ;;  %v2124_v63 = vld [vmem:[%s3280_s6 + $0x24] sm:$0xf]  ;;  %v2024_v60 = vld [vmem:[%s3280_s6 + $0x28] sm:$0xf0]  ;;  %v2023_v10 = vor.u32 %v2125_v29, %v2022_v23  ;;  %v2014_v39 = vld [vmem:[%s3280_s6 + $0x10] sm:$0xf] }
 0x5ca   :  { %v2027_v52 = vor.u32 %v2124_v63, %v2024_v60  ;;  %v2123_v5 = vld [vmem:[%s3280_s6 + $0x14] sm:$0xf0]  ;;  %v2122_v46 = vld [vmem:[%s3280_s6 + $0x14] sm:$0xf]  ;;  %v2016_v47 = vld [vmem:[%s3280_s6 + $0x18] sm:$0xf0] }
 0x5cb   :  { %v2015_v48 = vor.u32 %v2123_v5, %v2014_v39  ;;  %v2019_v22 = vor.u32 %v2122_v46, %v2016_v47  ;;  %v2006_v35 = vld [vmem:[%s3280_s6] sm:$0xf]  ;;  %v2121_v58 = vld [vmem:[%s3280_s6 + $0x4] sm:$0xf0]  ;;  %v2120_v44 = vld [vmem:[%s3280_s6 + $0x4] sm:$0xf] }
 0x5cc   :  { %1709 = vmatpush.bf16.msra.mxu0 %v2047_v3  ;;  %v2008_v40 = vld [vmem:[%s3280_s6 + $0x8] sm:$0xf0]  ;;  %v2007_v59 = vor.u32 %v2121_v58, %v2006_v35  ;;  %v1621_v36 = vld [vmem:[%s3281_s7] sm:$0x3] }
 0x5cd   :  { %1722 = vmatpush.bf16.msra.mxu1 %v2051_v9  ;;  %v2011_v62 = vor.u32 %v2120_v44, %v2008_v40  ;;  %v1623_v19 = vperm.slane %v1621_v36, 0  ;;  %v1624_v57 = vperm.slane %v1621_v36, 1 }
 0x5d0   :  { %1710 = vmatpush.bf16.msra.mxu0 %v2039_v31 }
 0x5d1   :  { %1723 = vmatpush.bf16.msra.mxu1 %v2043_v14 }
 0x5d4   :  { %1711 = vmatpush.bf16.msra.mxu0 %v2031_v51 }
 0x5d5   :  { %1724 = vmatpush.bf16.msra.mxu1 %v2035_v7 }
 0x5d8   :  { %1712 = vmatpush.bf16.msra.mxu0 %v2023_v10 }
 0x5d9   :  { %1725 = vmatpush.bf16.msra.mxu1 %v2027_v52 }
 0x5dc   :  { %1713 = vmatpush.bf16.msra.mxu0 %v2015_v48 }
 0x5dd   :  { %1726 = vmatpush.bf16.msra.mxu1 %v2019_v22 }
 0x5e0   :  { %1714 = vmatpush.bf16.msra.mxu0 %v2007_v59 }
 0x5e1   :  { %1727 = vmatpush.bf16.msra.mxu1 %v2011_v62 }
 0x5e3   :  { %1715 = vmatmul.bf16.vlgmr.msra.gmra.mxu0 %v1604_v17 }
 0x5e4   :  { %1728 = vmatmul.bf16.vlgmr.msra.gmra.mxu1 %v1604_v17 }
 0x660   :  { %v1716_v0 = vpop.f32.mrf.mxu0 }
 0x661   :  { %v1717_v4 = vadd.f32 %v1716_v0, %v1623_v19  ;;  %v1729_v42 = vpop.f32.mrf.mxu1 }
 0x662   :  { %v1730_v6 = vadd.f32 %v1729_v42, %v1624_v57 }
 0x663   :  { %1733 = vst [vmem:[%s3282_s8] sm:$0xff] %v1717_v4 }
 0x664   :  { %1734 = vst [vmem:[%s3282_s8 + $0x8] sm:$0xff] %v1730_v6 }
 0x668   :  { %v1718_v12 = vpop.f32.mrf.mxu0 }
 0x669   :  { %v1731_v16 = vpop.f32.mrf.mxu1 }

</bundles_post_ra>
